<compile_context>
chip_gen: v7x
topology: tpu7x:2x2x1
jax: 0.10.0
libtpu: 0.0.40
codegen_flags: <defaults>
</compile_context>

<pallas_src>
import jax
import jax.numpy as jnp
import numpy as np
from jax.experimental import pallas as pl
from jax.experimental.pallas import tpu as pltpu


def _round_up(x, m):
    return (x + m - 1) // m * m


def _pick_rows_per_chunk(H, WPAD, target_lanes):
    """Rows handled per grid step: a divisor of H with th*WPAD <= target."""
    divs = [d for d in range(1, H + 1) if H % d == 0 and d * WPAD <= target_lanes]
    return max(divs) if divs else 1


def g_final_block(x, weight, bias, *, target_block_lanes=1024):
    """ConvTranspose2d(in, out, kernel_size=4, stride=2, padding=1) + Tanh.

    x:      (N, Cin, H, W) float32
    weight: (Cin, Cout, 4, 4)   (PyTorch ConvTranspose2d weight layout)
    bias:   (Cout,)
    returns (N, Cout, 2H, 2W) float32
    """
    N, Cin, H, W = x.shape
    Cout = weight.shape[1]
    P = 4 * Cout                      # the 4 stride-2 sub-pixel phases, packed
    WPAD = _round_up(W + 2, 128)      # lane axis: 1+1 halo cols + scratch to 128x
    th = _pick_rows_per_chunk(H, WPAD, target_block_lanes)
    Lc = th * WPAD                    # lanes produced per grid step (acc ~16 vregs)
    n_chunks = H // th

    # --- pack the 4 sub-pixel phases into a (9, P, Cin) tap table -------------
    # Output row 2i+r: phase r=0 uses padded rows {i, i+1} with taps {kh=3, kh=1};
    # phase r=1 uses padded rows {i+1, i+2} with taps {kh=2, kh=0} (same for cols).
    taps = {0: [(0, 3), (1, 1)], 1: [(1, 2), (2, 0)]}
    wbig = jnp.zeros((3, 3, 2, 2, Cout, Cin), dtype=jnp.float32)
    for r, row_taps in taps.items():
        for (a, kh) in row_taps:
            for c, col_taps in taps.items():
                for (b, kw) in col_taps:
                    wbig = wbig.at[a, b, r, c, :, :].set(weight[:, :, kh, kw].T)
    wpack = wbig.reshape(9, P, Cin).astype(jnp.bfloat16)          # (tap, P, Cin)
    bpack = jnp.tile(bias.astype(jnp.float32), 4).reshape(P, 1)   # (P, 1)

    # --- one fused XLA prep pass: cast bf16, spatial pad, halo'd row chunks ---
    xb = x.astype(jnp.bfloat16)
    x_pad = jnp.pad(xb, ((0, 0), (0, 0), (1, 1), (1, WPAD - W - 1)))
    # overlapping chunks of th+2 padded rows, flattened onto the lane axis
    x_chunks = jnp.stack(
        [x_pad[:, :, c * th: c * th + th + 2, :] for c in range(n_chunks)], axis=1)
    x_chunks = x_chunks.reshape(N * n_chunks, Cin, (th + 2) * WPAD)

    def kernel(x_ref, w_ref, b_ref, o_ref):
        # x_ref: (Cin, (th+2)*WPAD) bf16 -- one row chunk incl. 2-row halo
        # w_ref: (9, P, Cin) bf16, b_ref: (P, 1) f32, o_ref: (P, Lc) bf16
        w = w_ref[...]
        acc = jnp.broadcast_to(b_ref[...], (P, Lc))        # start from the bias
        # TODO(synk): fold the 3 row taps into the contraction dim (K=3*Cin)
        # once Cin is sublane-aligned; modest win here since the kernel is
        # memory/overhead bound.
        for a in range(3):                                 # tap rows (static)
            flat = x_ref[:, a * WPAD: a * WPAD + Lc]       # (Cin, Lc), lane-aligned
            for b in range(3):                             # tap cols (static)
                res = jnp.dot(w[a * 3 + b], flat,
                              preferred_element_type=jnp.float32)
                if b:
                    # left-shift by b lanes (roll by Lc-b == roll by -b): the
                    # wrapped lanes land only in the >=W scratch columns of the
                    # chunk's last row, which the wrapper drops.
                    res = pltpu.roll(res, Lc - b, axis=1)
                acc = acc + res
        o_ref[...] = jnp.tanh(acc).astype(o_ref.dtype)

    cost = pl.CostEstimate(
        flops=2 * N * n_chunks * 9 * P * Cin * Lc,
        transcendentals=N * n_chunks * P * Lc,
        bytes_accessed=(x_chunks.size * 2 + wpack.size * 2 + bpack.size * 4
                        + N * P * H * WPAD * 2))

    out_flat = pl.pallas_call(
        kernel,
        out_shape=jax.ShapeDtypeStruct((N, P, H * WPAD), jnp.bfloat16),
        grid=(N, n_chunks),
        in_specs=[
            pl.BlockSpec((None, Cin, (th + 2) * WPAD),
                         lambda n, c: (n * n_chunks + c, 0, 0)),
            pl.BlockSpec((9, P, Cin), lambda n, c: (0, 0, 0)),    # packed taps
            pl.BlockSpec((P, 1), lambda n, c: (0, 0)),            # bias
        ],
        out_specs=pl.BlockSpec((None, P, Lc), lambda n, c: (n, 0, c)),
        compiler_params=pltpu.CompilerParams(
            dimension_semantics=("parallel", "parallel")),
        cost_estimate=cost,
    )(x_chunks, wpack, bpack)

    # --- drop scratch cols, interleave the 2x2 sub-pixel phases, back to NCHW --
    out = out_flat.reshape(N, 2, 2, Cout, H, WPAD)[..., :W]       # (N,r,c,Co,H,W)
    out = jnp.transpose(out, (0, 3, 4, 1, 5, 2)).reshape(N, Cout, 2 * H, 2 * W)
    return out.astype(jnp.float32)


def _reference(x, weight, bias):
    """Pure-JAX reference for ConvTranspose2d(k=4, s=2, p=1) + Tanh."""
    w = jnp.flip(weight, axis=(2, 3))            # flip spatial taps
    w = jnp.transpose(w, (1, 0, 2, 3))           # -> OIHW (Cout, Cin, 4, 4)
    y = jax.lax.conv_general_dilated(
        x, w, window_strides=(1, 1), padding=[(2, 2), (2, 2)],
        lhs_dilation=(2, 2),
        dimension_numbers=("NCHW", "OIHW", "NCHW"))
    return jnp.tanh(y + bias[None, :, None, None])


if __name__ == "__main__":
    N, Cin, Cout, H, W = 2, 4, 3, 16, 16

    key = jax.random.PRNGKey(0)
    kx, kw, kb = jax.random.split(key, 3)
    x = jax.random.normal(kx, (N, Cin, H, W), jnp.float32)
    bound = 1.0 / np.sqrt(Cin * 4 * 4)           # PyTorch-style uniform init bound
    weight = jax.random.uniform(kw, (Cin, Cout, 4, 4), jnp.float32, -bound, bound)
    bias = jax.random.uniform(kb, (Cout,), jnp.float32, -bound, bound)

    fwd = jax.jit(g_final_block)
    out = jax.block_until_ready(fwd(x, weight, bias))
    assert out.shape == (N, Cout, 2 * H, 2 * W), out.shape

    ref = _reference(x, weight, bias)
    # bf16 activation/weight streaming and bf16 output -> loose tolerance.
    np.testing.assert_allclose(np.asarray(out), np.asarray(ref), atol=2e-2, rtol=2e-2)

    print("KERNEL_OK")
</pallas_src>

<mosaic_0001>
module attributes {stable_mosaic.version = 11 : i64} {
  func.func @kernel(%arg0: i32, %arg1: i32, %arg2: memref<1x4x1280xbf16, #tpu.memory_space<vmem>>, %arg3: memref<9x12x4xbf16, #tpu.memory_space<vmem>>, %arg4: memref<12x1xf32, #tpu.memory_space<vmem>>, %arg5: memref<1x12x1024xbf16, #tpu.memory_space<vmem>>) attributes {dimension_semantics = [#tpu.dimension_semantics<parallel>, #tpu.dimension_semantics<parallel>], iteration_bounds = array<i64: 2, 2>, scalar_prefetch = 0 : i64, scratch_operands = 0 : i64, tpu.core_type = #tpu.core_type<tc>, window_params = [{transform_indices = @transform_0, window_bounds = array<i64: 1, 4, 1280>}, {pipeline_mode = #tpu.pipeline_mode<synchronous>, transform_indices = @transform_1, window_bounds = array<i64: 9, 12, 4>}, {pipeline_mode = #tpu.pipeline_mode<synchronous>, transform_indices = @transform_2, window_bounds = array<i64: 12, 1>}, {transform_indices = @transform_3, window_bounds = array<i64: 1, 12, 1024>}]} {
    %c0 = arith.constant 0 : index
    %c0_0 = arith.constant 0 : index
    %c0_1 = arith.constant 0 : index
    %0 = vector.load %arg3[%c0, %c0_0, %c0_1] : memref<9x12x4xbf16, #tpu.memory_space<vmem>>, vector<9x12x4xbf16>
    %c0_2 = arith.constant 0 : index
    %c0_3 = arith.constant 0 : index
    %1 = vector.load %arg4[%c0_2, %c0_3] : memref<12x1xf32, #tpu.memory_space<vmem>>, vector<12x1xf32>
    %2 = vector.shape_cast %1 : vector<12x1xf32> to vector<12x1xf32>
    %3 = vector.broadcast %2 : vector<12x1xf32> to vector<12x1024xf32>
    %c0_4 = arith.constant 0 : index
    %c0_5 = arith.constant 0 : index
    %c0_6 = arith.constant 0 : index
    %4 = vector.load %arg2[%c0_4, %c0_5, %c0_6] : memref<1x4x1280xbf16, #tpu.memory_space<vmem>>, vector<1x4x1024xbf16>
    %5 = vector.shape_cast %4 : vector<1x4x1024xbf16> to vector<4x1024xbf16>
    %6 = vector.extract_strided_slice %0 {offsets = [0, 0, 0], sizes = [1, 12, 4], strides = [1, 1, 1]} : vector<9x12x4xbf16> to vector<1x12x4xbf16>
    %7 = vector.shape_cast %6 : vector<1x12x4xbf16> to vector<12x4xbf16>
    %cst = arith.constant dense<0.000000e+00> : vector<12x1024xf32>
    %8 = tpu.matmul %7, %5, %cst {dimension_numbers = #tpu.dot_dimension_numbers<[1], [0], [0], [1], [0, 0, 1, 1], [], []>} : vector<12x4xbf16>, vector<4x1024xbf16>, vector<12x1024xf32> -> vector<12x1024xf32>
    %9 = arith.addf %3, %8 : vector<12x1024xf32>
    %10 = vector.extract_strided_slice %0 {offsets = [1, 0, 0], sizes = [1, 12, 4], strides = [1, 1, 1]} : vector<9x12x4xbf16> to vector<1x12x4xbf16>
    %11 = vector.shape_cast %10 : vector<1x12x4xbf16> to vector<12x4xbf16>
    %cst_7 = arith.constant dense<0.000000e+00> : vector<12x1024xf32>
    %12 = tpu.matmul %11, %5, %cst_7 {dimension_numbers = #tpu.dot_dimension_numbers<[1], [0], [0], [1], [0, 0, 1, 1], [], []>} : vector<12x4xbf16>, vector<4x1024xbf16>, vector<12x1024xf32> -> vector<12x1024xf32>
    %c1023_i32 = arith.constant 1023 : i32
    %13 = tpu.dynamic_rotate %12 by %c1023_i32 dim 1 : vector<12x1024xf32>, i32 -> vector<12x1024xf32>
    %14 = arith.addf %9, %13 : vector<12x1024xf32>
    %15 = vector.extract_strided_slice %0 {offsets = [2, 0, 0], sizes = [1, 12, 4], strides = [1, 1, 1]} : vector<9x12x4xbf16> to vector<1x12x4xbf16>
    %16 = vector.shape_cast %15 : vector<1x12x4xbf16> to vector<12x4xbf16>
    %cst_8 = arith.constant dense<0.000000e+00> : vector<12x1024xf32>
    %17 = tpu.matmul %16, %5, %cst_8 {dimension_numbers = #tpu.dot_dimension_numbers<[1], [0], [0], [1], [0, 0, 1, 1], [], []>} : vector<12x4xbf16>, vector<4x1024xbf16>, vector<12x1024xf32> -> vector<12x1024xf32>
    %c1022_i32 = arith.constant 1022 : i32
    %18 = tpu.dynamic_rotate %17 by %c1022_i32 dim 1 : vector<12x1024xf32>, i32 -> vector<12x1024xf32>
    %19 = arith.addf %14, %18 : vector<12x1024xf32>
    %c0_9 = arith.constant 0 : index
    %c0_10 = arith.constant 0 : index
    %c128 = arith.constant 128 : index
    %20 = vector.load %arg2[%c0_9, %c0_10, %c128] : memref<1x4x1280xbf16, #tpu.memory_space<vmem>>, vector<1x4x1024xbf16>
    %21 = vector.shape_cast %20 : vector<1x4x1024xbf16> to vector<4x1024xbf16>
    %22 = vector.extract_strided_slice %0 {offsets = [3, 0, 0], sizes = [1, 12, 4], strides = [1, 1, 1]} : vector<9x12x4xbf16> to vector<1x12x4xbf16>
    %23 = vector.shape_cast %22 : vector<1x12x4xbf16> to vector<12x4xbf16>
    %cst_11 = arith.constant dense<0.000000e+00> : vector<12x1024xf32>
    %24 = tpu.matmul %23, %21, %cst_11 {dimension_numbers = #tpu.dot_dimension_numbers<[1], [0], [0], [1], [0, 0, 1, 1], [], []>} : vector<12x4xbf16>, vector<4x1024xbf16>, vector<12x1024xf32> -> vector<12x1024xf32>
    %25 = arith.addf %19, %24 : vector<12x1024xf32>
    %26 = vector.extract_strided_slice %0 {offsets = [4, 0, 0], sizes = [1, 12, 4], strides = [1, 1, 1]} : vector<9x12x4xbf16> to vector<1x12x4xbf16>
    %27 = vector.shape_cast %26 : vector<1x12x4xbf16> to vector<12x4xbf16>
    %cst_12 = arith.constant dense<0.000000e+00> : vector<12x1024xf32>
    %28 = tpu.matmul %27, %21, %cst_12 {dimension_numbers = #tpu.dot_dimension_numbers<[1], [0], [0], [1], [0, 0, 1, 1], [], []>} : vector<12x4xbf16>, vector<4x1024xbf16>, vector<12x1024xf32> -> vector<12x1024xf32>
    %c1023_i32_13 = arith.constant 1023 : i32
    %29 = tpu.dynamic_rotate %28 by %c1023_i32_13 dim 1 : vector<12x1024xf32>, i32 -> vector<12x1024xf32>
    %30 = arith.addf %25, %29 : vector<12x1024xf32>
    %31 = vector.extract_strided_slice %0 {offsets = [5, 0, 0], sizes = [1, 12, 4], strides = [1, 1, 1]} : vector<9x12x4xbf16> to vector<1x12x4xbf16>
    %32 = vector.shape_cast %31 : vector<1x12x4xbf16> to vector<12x4xbf16>
    %cst_14 = arith.constant dense<0.000000e+00> : vector<12x1024xf32>
    %33 = tpu.matmul %32, %21, %cst_14 {dimension_numbers = #tpu.dot_dimension_numbers<[1], [0], [0], [1], [0, 0, 1, 1], [], []>} : vector<12x4xbf16>, vector<4x1024xbf16>, vector<12x1024xf32> -> vector<12x1024xf32>
    %c1022_i32_15 = arith.constant 1022 : i32
    %34 = tpu.dynamic_rotate %33 by %c1022_i32_15 dim 1 : vector<12x1024xf32>, i32 -> vector<12x1024xf32>
    %35 = arith.addf %30, %34 : vector<12x1024xf32>
    %c0_16 = arith.constant 0 : index
    %c0_17 = arith.constant 0 : index
    %c256 = arith.constant 256 : index
    %36 = vector.load %arg2[%c0_16, %c0_17, %c256] : memref<1x4x1280xbf16, #tpu.memory_space<vmem>>, vector<1x4x1024xbf16>
    %37 = vector.shape_cast %36 : vector<1x4x1024xbf16> to vector<4x1024xbf16>
    %38 = vector.extract_strided_slice %0 {offsets = [6, 0, 0], sizes = [1, 12, 4], strides = [1, 1, 1]} : vector<9x12x4xbf16> to vector<1x12x4xbf16>
    %39 = vector.shape_cast %38 : vector<1x12x4xbf16> to vector<12x4xbf16>
    %cst_18 = arith.constant dense<0.000000e+00> : vector<12x1024xf32>
    %40 = tpu.matmul %39, %37, %cst_18 {dimension_numbers = #tpu.dot_dimension_numbers<[1], [0], [0], [1], [0, 0, 1, 1], [], []>} : vector<12x4xbf16>, vector<4x1024xbf16>, vector<12x1024xf32> -> vector<12x1024xf32>
    %41 = arith.addf %35, %40 : vector<12x1024xf32>
    %42 = vector.extract_strided_slice %0 {offsets = [7, 0, 0], sizes = [1, 12, 4], strides = [1, 1, 1]} : vector<9x12x4xbf16> to vector<1x12x4xbf16>
    %43 = vector.shape_cast %42 : vector<1x12x4xbf16> to vector<12x4xbf16>
    %cst_19 = arith.constant dense<0.000000e+00> : vector<12x1024xf32>
    %44 = tpu.matmul %43, %37, %cst_19 {dimension_numbers = #tpu.dot_dimension_numbers<[1], [0], [0], [1], [0, 0, 1, 1], [], []>} : vector<12x4xbf16>, vector<4x1024xbf16>, vector<12x1024xf32> -> vector<12x1024xf32>
    %c1023_i32_20 = arith.constant 1023 : i32
    %45 = tpu.dynamic_rotate %44 by %c1023_i32_20 dim 1 : vector<12x1024xf32>, i32 -> vector<12x1024xf32>
    %46 = arith.addf %41, %45 : vector<12x1024xf32>
    %47 = vector.extract_strided_slice %0 {offsets = [8, 0, 0], sizes = [1, 12, 4], strides = [1, 1, 1]} : vector<9x12x4xbf16> to vector<1x12x4xbf16>
    %48 = vector.shape_cast %47 : vector<1x12x4xbf16> to vector<12x4xbf16>
    %cst_21 = arith.constant dense<0.000000e+00> : vector<12x1024xf32>
    %49 = tpu.matmul %48, %37, %cst_21 {dimension_numbers = #tpu.dot_dimension_numbers<[1], [0], [0], [1], [0, 0, 1, 1], [], []>} : vector<12x4xbf16>, vector<4x1024xbf16>, vector<12x1024xf32> -> vector<12x1024xf32>
    %c1022_i32_22 = arith.constant 1022 : i32
    %50 = tpu.dynamic_rotate %49 by %c1022_i32_22 dim 1 : vector<12x1024xf32>, i32 -> vector<12x1024xf32>
    %51 = arith.addf %46, %50 : vector<12x1024xf32>
    %52 = math.tanh %51 : vector<12x1024xf32>
    %53 = arith.truncf %52 : vector<12x1024xf32> to vector<12x1024xbf16>
    %c0_23 = arith.constant 0 : index
    %c0_24 = arith.constant 0 : index
    %c0_25 = arith.constant 0 : index
    %54 = vector.load %arg5[%c0_23, %c0_24, %c0_25] : memref<1x12x1024xbf16, #tpu.memory_space<vmem>>, vector<1x12x1024xbf16>
    %55 = vector.shape_cast %54 : vector<1x12x1024xbf16> to vector<12x1024xbf16>
    %56 = vector.shape_cast %53 : vector<12x1024xbf16> to vector<1x12x1024xbf16>
    tpu.vector_store %arg5[%c0_23, %c0_24, %c0_25], %56 {strides = array<i32>} : memref<1x12x1024xbf16, #tpu.memory_space<vmem>>, vector<1x12x1024xbf16>,
    return
  }
  func.func @transform_0(%arg0: i32, %arg1: i32) -> (i32, i32, i32) {
    %c2_i32 = arith.constant 2 : i32
    %0 = arith.muli %arg0, %c2_i32 : i32
    %1 = arith.addi %0, %arg1 : i32
    %c0_i32 = arith.constant 0 : i32
    %c0_i32_0 = arith.constant 0 : i32
    %c0_i32_1 = arith.constant 0 : i32
    return %1, %c0_i32, %c0_i32_0 : i32, i32, i32
  }
  func.func @transform_1(%arg0: i32, %arg1: i32) -> (i32, i32, i32) {
    %c0_i32 = arith.constant 0 : i32
    %c0_i32_0 = arith.constant 0 : i32
    %c0_i32_1 = arith.constant 0 : i32
    %c0_i32_2 = arith.constant 0 : i32
    return %c0_i32, %c0_i32_0, %c0_i32_1 : i32, i32, i32
  }
  func.func @transform_2(%arg0: i32, %arg1: i32) -> (i32, i32) {
    %c0_i32 = arith.constant 0 : i32
    %c0_i32_0 = arith.constant 0 : i32
    %c0_i32_1 = arith.constant 0 : i32
    return %c0_i32, %c0_i32_0 : i32, i32
  }
  func.func @transform_3(%arg0: i32, %arg1: i32) -> (i32, i32, i32) {
    %c0_i32 = arith.constant 0 : i32
    %c0_i32_0 = arith.constant 0 : i32
    return %arg0, %c0_i32, %arg1 : i32, i32, i32
  }
}

</mosaic_0001>

<bundles_post_ra>
// kernel: tile.0
= control target key start
LH: loop header
LB: loop body
LE: loop exit
PB: predicated region body
PF: predicated region fallthrough
CT: control target
= control target key end

     0   :  { %vm7_vm0 = vcmask 7168   ;;  %s26_s10 = smov 126   ;;  %s49_s0 = inlined_call_operand.vmem [shape: f32[4,3], index: 0, kind: input, shape index: {}]   ;;  %s50_s1 = inlined_call_operand.vmem [shape: f32[12,1], index: 1, kind: output, shape index: {}]  }
   0x1   :  { %v4_v0 = vld [vmem:[%s49_s0] sm:$0xf]  ;;  %s25_s0 = smov 127  }
   0x2   :  { %5 = vst [vmem:[#allocation0] sm:$0xf] %v4_v0 }
   0x9   :  { %v9_v1 = vld [vmem:[#allocation0] sm:$0xf]  }
   0xa   :  { %v6_v2 = vld [vmem:[#allocation0] sm:$0xf]   ;;  %10 = vrot.lane.b32.xlu0 %v9_v1, %s25_s0 }
   0xb   :  { %8 = vst.msk [vmem:[%s50_s1] ss:$3 sm:$0xf] %vm7_vm0, %v6_v2   ;;  %v15_v3 = vld [vmem:[#allocation0] sm:$0xf]  }
   0xe   :  { %16 = vrot.lane.b32.xlu0 %v15_v3, %s26_s10 }
  0x7c   :  { %v11_v4 = vpop.permute.xlu0 %10  }
  0x7d   :  { %21 = vst.msk [vmem:[%s50_s1 + $0x1] ss:$3 sm:$0xf] %vm7_vm0, %v11_v4  }
  0x80   :  { %v17_v5 = vpop.permute.xlu0 %16  }
  0x81   :  { %22 = vst.msk [vmem:[%s50_s1 + $0x2] ss:$3 sm:$0xf] %vm7_vm0, %v17_v5  }

// kernel: tile.8
= control target key start
LH: loop header
LB: loop body
LE: loop exit
PB: predicated region body
PF: predicated region fallthrough
CT: control target
= control target key end

     0   :  { %2 = vsyncpa [#allocation1], 0  ;;  %s44_s6 = smov [#allocation0]   ;;  %s70_s0 = inlined_call_operand.hbm [shape: f32[3], index: 0, kind: input, shape index: {}]   ;;  %s71_s1 = inlined_call_operand.vmem [shape: f32[4,3], index: 1, kind: output, shape index: {}]  }
   0x1   :  { %s9_s7 = sshll.u32 %s44_s6, 4  ;;  %s20_s10 = scalar_lea.hbm %s70_s0, 16  ;;  %s10_s7 = int_to_ptr.vmem [resolvable:$true] %s9_s7 }
   0x2   :  { %p21_p0 = scmp.ne.s32.totalorder %s70_s0, %s20_s10  ;;  %p24_p1 = scmp.lt.u32.totalorder %s20_s10, %s70_s0 }
   0x4   :  { %p26_p2 = pnand %p24_p1, %p21_p0 }
   0x6   :  { %29 = shalt.err (!%p26_p2)
}
   0x7   :  { %s30_s15 = scalar_lea.vmem %s10_s7, 16  ;;  %s34_s16 = scalar_lea.vmem %s10_s7, 32 }
   0x8   :  { %p31_p3 = scmp.ne.s32.totalorder %s10_s7, %s30_s15  ;;  %p35_p4 = scmp.lt.s32.totalorder %s10_s7, %s10_s7 }
   0x9   :  { %p36_p5 = scmp.lt.s32.totalorder %s34_s16, %s30_s15 }
   0xb   :  { %p37_p6 = por %p36_p5, %p35_p4 }
   0xd   :  { %p38_p7 = pnand %p37_p6, %p31_p3 }
   0xf   :  { %41 = shalt.err (!%p38_p7)
}
  0x10   :  { %12 = dma.hbm_to_vmem [thread:$0]  %s70_s0, 16, %s10_s7, [#allocation1]  }
  0x11   :  { %42 = dma.done.wait [#allocation1], 16  }
  0x12   :  { %43 = vsyncadd [#allocation1], 4294967280  ;;  %v16_v0 = vld [vmem:[#allocation0] ss:$0 sm:$0xff] }
  0x13   :  { %17 = vst [vmem:[%s71_s1] sm:$0xf] %v16_v0 }
  0x14   :  { %18 = vsyncpa [#allocation1], 1 }

// kernel: g_final_block.1
= control target key start
LH: loop header
LB: loop body
LE: loop exit
PB: predicated region body
PF: predicated region fallthrough
CT: control target
= control target key end

     0   :  { %s3063_s12 = smov 0   ;;  %s3065_s13 = smov 0   ;;  %s3946_s0 = inlined_call_operand.vmem [shape: bf16[4,4,1280], index: 0, kind: input, shape index: {}]   ;;  %s3947_s1 = inlined_call_operand.vmem [shape: bf16[9,12,4], index: 1, kind: input, shape index: {}]   ;;  %s3948_s2 = inlined_call_operand.vmem [shape: f32[12,1], index: 2, kind: input, shape index: {}]   ;;  %s3949_s3 = inlined_call_operand.vmem [shape: bf16[2,12,2048], index: 3, kind: output, shape index: {}]  }
   0x1   :  { %s3067_s14 = smov 0   ;;  %s3069_s15 = smov 0  }
   0x2   :  { %s3071_s16 = smov 0   ;;  %s3073_s17 = smov 0  }
   0x3   :  { %s3075_s18 = smov 0  }
   0x4 LB: > { %s22_s19 = sadd.s32 1, %s3029_s16  ;;  %s25_s20 = sadd.s32 1, %s3033_s17  ;;  %s3037_s18 = sphi %s3075_s18, %s13_s18   ;;  %s3033_s17 = sphi %s3073_s17, %s3962_s17   ;;  %s3029_s16 = sphi %s3071_s16, %s3961_s16   ;;  %s3025_s15 = sphi %s3069_s15, %s3960_s15   ;;  %s3021_s14 = sphi %s3067_s14, %s3959_s14   ;;  %s3017_s13 = sphi %s3065_s13, %s3958_s13   ;;  %s3013_s12 = sphi %s3063_s12, %s3957_s12  }
   0x5   : > { %p23_p0 = scmp.ge.s32.totalorder %s22_s19, 2  ;;  %s2649_s21 = sadd.s32 4294967295, %s3037_s18  }
   0x6   : > { %p116_p1 = scmp.ne.s32.totalorder %s3017_s13, %s3013_s12  ;;  %p117_p2 = scmp.eq.s32.totalorder %s2649_s21, 3 }
   0x7   : > { %s3964_s19 = smov (%p23_p0, %s22_s19), 0  ;;  %s3966_s20 = smov (!%p23_p0, %s25_s20), %s3033_s17 }
   0x8   : > { %s102_s22 = ssub.s32 %s3029_s16, %s3964_s19  ;;  %p27_p3 = scmp.ge.s32.totalorder %s3966_s20, 2 }
   0x9   : > { %p2655_p4 = scmp.ge.s32.totalorder %s3037_s18, 1  ;;  %p3109_p5 = por %p117_p2, %p116_p1 }
   0xa   : > { %p159_p6 = scmp.lt.s32.totalorder %s3037_s18, 5  ;;  %s3968_s20 = smov (%p27_p3, %s3966_s20), 0 }
   0xb   : > { %s101_s24 = ssub.s32 %s3033_s17, %s3968_s20  ;;  %s106_s26 = sadd.s32 1, %s3017_s13 }
   0xc   : > { %p160_p7 = pnand %p2655_p4, %p159_p6  ;;  %s103_s25 = sor.u32 %s102_s22, %s101_s24 }
   0xd   : > { %p104_p8 = scmp.eq.s32.totalorder %s103_s25, 0 }
   0xe   : > { %163 = sbr.rel (%p160_p7) target bundleno = 599 (0x257), region = 32 }
   0xf   : > { %s3120_s27 = scalar_select %p104_p8, %s3017_s13, %s106_s26  }
  0x15   : > { %s2657_s28 = sshll.u32 %s3025_s15, 1  ;;  %v238_v0 = vlaneseq  ;;  %v3039_v1 = vmov 1983009808   ;;  %v3040_v3 = vmov 0   ;;  %vm272_vm0 = vcmask 1041408   ;;  %v213_v32 = vld [vmem:[%s3948_s2] sm:$0xff] }
  0x16   : > { %s185_s29 = sadd.s32 %s3021_s14, %s2657_s28  ;;  %v236_v2 = vunpack.c.l.s4 %v3039_v1  ;;  %329 = vmatprep.mubr.bf16.mxu0 %v3040_v3  ;;  %372 = vmatprep.mubr.bf16.mxu1 %v3040_v3  ;;  %v2937_v21 = vld [vmem:[%s3947_s1] sm:$0x3f]   ;;  %vm268_vm1 = vcmask 31744   ;;  %v2939_v33 = vld [vmem:[%s3947_s1 + $0x8] sm:$0x3f]   ;;  %s3041_s22 = smov 127  }
  0x17   : > { %p186_p9 = scmp.lt.s32.totalorder %s185_s29, 3  ;;  %v239_v4 = vshrl.u32 %v238_v0, 7  ;;  %2935 = vset.pattern.permute.xlu0 %v3040_v3  ;;  %v214_v34 = vld [vmem:[%s3948_s2 + $0x8] sm:$0xf]  ;;  %v2940_v38 = vld [vmem:[%s3947_s1 + $0x10] sm:$0x3f]  }
  0x18   : > { %v237_v5 = vunpack.c.0.s8 %v236_v2  ;;  %217 = vperm.xlu0 %2935, %v213_v32   ;;  %v2942_v50 = vld [vmem:[%s3947_s1 + $0x18] sm:$0x3f]   ;;  %v2944_v53 = vld [vmem:[%s3947_s1 + $0x20] sm:$0x3f]   ;;  %v2945_v54 = vld [vmem:[%s3947_s1 + $0x28] sm:$0x3f]  }
  0x19   : > { %s3970_s29 = smov (!%p186_p9, %s185_s29), 3  ;;  %v2947_v61 = vld [vmem:[%s3947_s1 + $0x30] sm:$0x3f]   ;;  %v2949_v1 = vld [vmem:[%s3947_s1 + $0x38] sm:$0x3f]   ;;  %s3042_s24 = smov 126  }
  0x1a   : > { %s2874_s30 = smul.u32 20, %s3970_s29  ;;  %v3128_v6 = vsub.s32 %v237_v5, %v239_v4  ;;  %v2950_v2 = vld [vmem:[%s3947_s1 + $0x40] sm:$0x3f]   ;;  %s181_s25 = sand.u32 1, %s3013_s12  }
  0x1b   : > { %s2656_s26 = sshll.u32 %s181_s25, 6  ;;  %s2749_s28 = sshll.u32 (%p3109_p5), %s3021_s14, 3 }
  0x1c   : > { %s3133_s6 = scalar_lea.vmem %s3946_s0, %s2874_s30  ;;  %222 = vperm.xlu0 %2935, %v214_v34   ;;  %s3877_s12 = scalar_lea.vmem [#allocation2], %s2656_s26 }
  0x1d   : > { %v225_v7 = vld [vmem:[%s3133_s6] sm:$0xff]  ;;  %v226_v8 = vld [vmem:[%s3133_s6 + $0x8] sm:$0xff]  ;;  %s2750_s29 = sshll.u32 (%p3109_p5), %s3025_s15, 5 }
  0x1e   : > { %v241_v9 = vrot.slane %v225_v7, %v3128_v6  ;;  %v234_v10 = vcombine.high %v225_v7, %v225_v7  ;;  %v258_v11 = vrot.slane %v226_v8, %v3128_v6  ;;  %v251_v12 = vcombine.high %v226_v8, %v226_v8  ;;  %v1723_v18 = vld [vmem:[%s3133_s6 + $0x4] sm:$0xff]  ;;  %v1724_v22 = vld [vmem:[%s3133_s6 + $0xc] sm:$0xff]  ;;  %s2550_s30 = sadd.s32 (%p3109_p5), %s2750_s29, %s2749_s28 }
  0x1f   : > { %v3153_v25 = vrot.slane %v1723_v18, %v3128_v6  ;;  %v1732_v26 = vcombine.high %v1723_v18, %v1723_v18  ;;  %v3156_v27 = vrot.slane %v1724_v22, %v3128_v6  ;;  %v1749_v28 = vcombine.high %v1724_v22, %v1724_v22  ;;  %v977_v35 = vld [vmem:[%s3133_s6 + $0x2] sm:$0xff]  ;;  %v978_v40 = vld [vmem:[%s3133_s6 + $0xa] sm:$0xff]  ;;  %s2751_s23 = sshll.u32 (%p3109_p5), %s2550_s30, 2 }
  0x20   : > { %v249_v13 = vcombine.high %v241_v9, %v241_v9  ;;  %v274_v14 = vsel %vm272_vm0, %v241_v9, 0  ;;  %v248_v15 = vrot.slane %v234_v10, %v3128_v6  ;;  %v266_v16 = vcombine.high %v258_v11, %v258_v11  ;;  %s2552_s6 = scalar_lea.vmem (%p3109_p5), %s3949_s3, %s2751_s23 }
  0x21   : > { %v265_v17 = vrot.slane %v251_v12, %v3128_v6  ;;  %v286_v24 = vsel %vm272_vm0, %v258_v11, 0  ;;  %v3162_v30 = vrot.slane %v1732_v26, %v3128_v6  ;;  %v3166_v31 = vrot.slane %v1749_v28, %v3128_v6 }
  0x22   : > { %2660 = vmatprep.subr.msk.bf16.mxu0 %vm272_vm0, %v249_v13  ;;  %v250_v19 = vcombine.high %v248_v15, %v248_v15  ;;  %v280_v20 = vsel %vm272_vm0, %v248_v15, 0  ;;  %v986_v36 = vcombine.high %v977_v35, %v977_v35  ;;  %v993_v37 = vrot.slane %v977_v35, %v3128_v6 }
  0x23   : > { %298 = vmatpush1.bf16.msra.mxu0 %v274_v14  ;;  %v267_v23 = vcombine.high %v265_v17, %v265_v17  ;;  %v292_v29 = vsel %vm272_vm0, %v265_v17, 0  ;;  %v1003_v43 = vcombine.high %v978_v40, %v978_v40  ;;  %v1010_v44 = vrot.slane %v978_v40, %v3128_v6 }
  0x24   : > { %2662 = vmatprep.subr.msk.bf16.mxu1 %vm272_vm0, %v250_v19  ;;  %2664 = vmatprep.subr.msk.bf16.mxu0 %vm272_vm0, %v266_v16  ;;  %v1000_v39 = vrot.slane %v986_v36, %v3128_v6  ;;  %v1001_v41 = vcombine.high %v993_v37, %v993_v37  ;;  %v1024_v46 = vsel %vm272_vm0, %v993_v37, 0  ;;  %v1747_v55 = vcombine.high %v3153_v25, %v3153_v25 }
  0x25   : > { %341 = vmatpush1.bf16.msra.mxu1 %v280_v20  ;;  %v1017_v45 = vrot.slane %v1003_v43, %v3128_v6  ;;  %v1018_v47 = vcombine.high %v1010_v44, %v1010_v44  ;;  %v1036_v51 = vsel %vm272_vm0, %v1010_v44, 0  ;;  %v1748_v56 = vcombine.high %v3162_v30, %v3162_v30 }
  0x26   : > { %2661 = vmatmul.mubr.msk.bf16.vlgmr.msra.gmra.mrb[0].mxu0 %vm268_vm1, %v2937_v21  ;;  %2666 = vmatprep.subr.msk.bf16.mxu1 %vm272_vm0, %v267_v23  ;;  %v1002_v42 = vcombine.high %v1000_v39, %v1000_v39  ;;  %v1030_v48 = vsel %vm272_vm0, %v1000_v39, 0  ;;  %v1770_v57 = vsel %vm272_vm0, %v3153_v25, 0  ;;  %v1764_v58 = vcombine.high %v3156_v27, %v3156_v27 }
  0x27   : > { %384 = vmatpush1.bf16.msra.mxu0 %v286_v24  ;;  %415 = vmatprep.mubr.bf16.mxu0 %v3040_v3  ;;  %v1019_v49 = vcombine.high %v1017_v45, %v1017_v45  ;;  %v1042_v52 = vsel %vm272_vm0, %v1017_v45, 0  ;;  %v1776_v59 = vsel %vm272_vm0, %v3162_v30, 0  ;;  %v1765_v60 = vcombine.high %v3166_v31, %v3166_v31 }
  0x28   : > { %2663 = vmatmul.mubr.msk.bf16.vlgmr.msra.gmra.mrb[0].mxu1 %vm268_vm1, %v2937_v21  ;;  %2669 = vmatprep.subr.msk.bf16.mxu0 %vm272_vm0, %v249_v13  ;;  %v1782_v62 = vsel %vm272_vm0, %v3156_v27, 0  ;;  %v1788_v63 = vsel %vm272_vm0, %v3166_v31, 0 }
  0x29   : > { %427 = vmatpush1.bf16.msra.mxu1 %v292_v29  ;;  %458 = vmatprep.mubr.bf16.mxu1 %v3040_v3 }
  0x2a   : > { %2671 = vmatprep.subr.msk.bf16.mxu1 %vm272_vm0, %v250_v19 }
  0x2e   : > { %2665 = vmatmul.mubr.msk.bf16.vlgmr.msra.gmra.mrb[4].mxu0 %vm268_vm1, %v2937_v21 }
  0x2f   : > { %494 = vmatpush1.bf16.msra.mxu0 %v274_v14  ;;  %525 = vmatprep.mubr.bf16.mxu0 %v3040_v3 }
  0x30   : > { %2667 = vmatmul.mubr.msk.bf16.vlgmr.msra.gmra.mrb[4].mxu1 %vm268_vm1, %v2937_v21  ;;  %2673 = vmatprep.subr.msk.bf16.mxu0 %vm272_vm0, %v266_v16 }
  0x31   : > { %537 = vmatpush1.bf16.msra.mxu1 %v280_v20  ;;  %568 = vmatprep.mubr.bf16.mxu1 %v3040_v3 }
  0x32   : > { %2675 = vmatprep.subr.msk.bf16.mxu1 %vm272_vm0, %v267_v23 }
  0x36   : > { %2670 = vmatmul.mubr.msk.bf16.vlgmr.msra.gmra.mrb[8].mxu0 %vm268_vm1, %v2939_v33 }
  0x37   : > { %580 = vmatpush1.bf16.msra.mxu0 %v286_v24  ;;  %611 = vmatprep.mubr.bf16.mxu0 %v3040_v3 }
  0x38   : > { %2672 = vmatmul.mubr.msk.bf16.vlgmr.msra.gmra.mrb[8].mxu1 %vm268_vm1, %v2939_v33  ;;  %2678 = vmatprep.subr.msk.bf16.mxu0 %vm272_vm0, %v249_v13 }
  0x39   : > { %623 = vmatpush1.bf16.msra.mxu1 %v292_v29  ;;  %654 = vmatprep.mubr.bf16.mxu1 %v3040_v3 }
  0x3a   : > { %2680 = vmatprep.subr.msk.bf16.mxu1 %vm272_vm0, %v250_v19 }
  0x3e   : > { %2674 = vmatmul.mubr.msk.bf16.vlgmr.msra.gmra.mrb[12].mxu0 %vm268_vm1, %v2939_v33 }
  0x3f   : > { %741 = vmatpush1.bf16.msra.mxu0 %v274_v14  ;;  %772 = vmatprep.mubr.bf16.mxu0 %v3040_v3 }
  0x40   : > { %2676 = vmatmul.mubr.msk.bf16.vlgmr.msra.gmra.mrb[12].mxu1 %vm268_vm1, %v2939_v33  ;;  %2682 = vmatprep.subr.msk.bf16.mxu0 %vm272_vm0, %v266_v16 }
  0x41   : > { %784 = vmatpush1.bf16.msra.mxu1 %v280_v20  ;;  %815 = vmatprep.mubr.bf16.mxu1 %v3040_v3 }
  0x42   : > { %2684 = vmatprep.subr.msk.bf16.mxu1 %vm272_vm0, %v267_v23 }
  0x46   : > { %2679 = vmatmul.mubr.msk.bf16.vlgmr.msra.gmra.mrb[16].mxu0 %vm268_vm1, %v2940_v38 }
  0x47   : > { %827 = vmatpush1.bf16.msra.mxu0 %v286_v24  ;;  %858 = vmatprep.mubr.bf16.mxu0 %v3040_v3 }
  0x48   : > { %2681 = vmatmul.mubr.msk.bf16.vlgmr.msra.gmra.mrb[16].mxu1 %vm268_vm1, %v2940_v38  ;;  %2687 = vmatprep.subr.msk.bf16.mxu0 %vm272_vm0, %v1001_v41 }
  0x49   : > { %870 = vmatpush1.bf16.msra.mxu1 %v292_v29  ;;  %901 = vmatprep.mubr.bf16.mxu1 %v3040_v3 }
  0x4a   : > { %2689 = vmatprep.subr.msk.bf16.mxu1 %vm272_vm0, %v1002_v42 }
  0x4e   : > { %2683 = vmatmul.mubr.msk.bf16.vlgmr.msra.gmra.mrb[20].mxu0 %vm268_vm1, %v2940_v38 }
  0x4f   : > { %1048 = vmatpush1.bf16.msra.mxu0 %v1024_v46  ;;  %1079 = vmatprep.mubr.bf16.mxu0 %v3040_v3 }
  0x50   : > { %2685 = vmatmul.mubr.msk.bf16.vlgmr.msra.gmra.mrb[20].mxu1 %vm268_vm1, %v2940_v38  ;;  %2691 = vmatprep.subr.msk.bf16.mxu0 %vm272_vm0, %v1018_v47 }
  0x51   : > { %1091 = vmatpush1.bf16.msra.mxu1 %v1030_v48  ;;  %1122 = vmatprep.mubr.bf16.mxu1 %v3040_v3 }
  0x52   : > { %2693 = vmatprep.subr.msk.bf16.mxu1 %vm272_vm0, %v1019_v49 }
  0x56   : > { %2688 = vmatmul.mubr.msk.bf16.vlgmr.msra.gmra.mrb[0].mxu0 %vm268_vm1, %v2942_v50 }
  0x57   : > { %1134 = vmatpush1.bf16.msra.mxu0 %v1036_v51  ;;  %1165 = vmatprep.mubr.bf16.mxu0 %v3040_v3 }
  0x58   : > { %2690 = vmatmul.mubr.msk.bf16.vlgmr.msra.gmra.mrb[0].mxu1 %vm268_vm1, %v2942_v50  ;;  %2696 = vmatprep.subr.msk.bf16.mxu0 %vm272_vm0, %v1001_v41 }
  0x59   : > { %1177 = vmatpush1.bf16.msra.mxu1 %v1042_v52  ;;  %1208 = vmatprep.mubr.bf16.mxu1 %v3040_v3 }
  0x5a   : > { %2698 = vmatprep.subr.msk.bf16.mxu1 %vm272_vm0, %v1002_v42 }
  0x5e   : > { %2692 = vmatmul.mubr.msk.bf16.vlgmr.msra.gmra.mrb[4].mxu0 %vm268_vm1, %v2942_v50 }
  0x5f   : > { %1244 = vmatpush1.bf16.msra.mxu0 %v1024_v46  ;;  %1275 = vmatprep.mubr.bf16.mxu0 %v3040_v3 }
  0x60   : > { %2694 = vmatmul.mubr.msk.bf16.vlgmr.msra.gmra.mrb[4].mxu1 %vm268_vm1, %v2942_v50  ;;  %2700 = vmatprep.subr.msk.bf16.mxu0 %vm272_vm0, %v1018_v47 }
  0x61   : > { %1287 = vmatpush1.bf16.msra.mxu1 %v1030_v48  ;;  %1318 = vmatprep.mubr.bf16.mxu1 %v3040_v3 }
  0x62   : > { %2702 = vmatprep.subr.msk.bf16.mxu1 %vm272_vm0, %v1019_v49 }
  0x66   : > { %2697 = vmatmul.mubr.msk.bf16.vlgmr.msra.gmra.mrb[24].mxu0 %vm268_vm1, %v2944_v53 }
  0x67   : > { %1330 = vmatpush1.bf16.msra.mxu0 %v1036_v51  ;;  %1361 = vmatprep.mubr.bf16.mxu0 %v3040_v3 }
  0x68   : > { %2699 = vmatmul.mubr.msk.bf16.vlgmr.msra.gmra.mrb[24].mxu1 %vm268_vm1, %v2944_v53  ;;  %2705 = vmatprep.subr.msk.bf16.mxu0 %vm272_vm0, %v1001_v41 }
  0x69   : > { %1373 = vmatpush1.bf16.msra.mxu1 %v1042_v52  ;;  %1404 = vmatprep.mubr.bf16.mxu1 %v3040_v3 }
  0x6a   : > { %2707 = vmatprep.subr.msk.bf16.mxu1 %vm272_vm0, %v1002_v42 }
  0x6e   : > { %2701 = vmatmul.mubr.msk.bf16.vlgmr.msra.gmra.mrb[28].mxu0 %vm268_vm1, %v2944_v53 }
  0x6f   : > { %1488 = vmatpush1.bf16.msra.mxu0 %v1024_v46  ;;  %1519 = vmatprep.mubr.bf16.mxu0 %v3040_v3 }
  0x70   : > { %2703 = vmatmul.mubr.msk.bf16.vlgmr.msra.gmra.mrb[28].mxu1 %vm268_vm1, %v2944_v53  ;;  %2709 = vmatprep.subr.msk.bf16.mxu0 %vm272_vm0, %v1018_v47 }
  0x71   : > { %1531 = vmatpush1.bf16.msra.mxu1 %v1030_v48  ;;  %1562 = vmatprep.mubr.bf16.mxu1 %v3040_v3 }
  0x72   : > { %2711 = vmatprep.subr.msk.bf16.mxu1 %vm272_vm0, %v1019_v49 }
  0x76   : > { %2706 = vmatmul.mubr.msk.bf16.vlgmr.msra.gmra.mrb[32].mxu0 %vm268_vm1, %v2945_v54 }
  0x77   : > { %1574 = vmatpush1.bf16.msra.mxu0 %v1036_v51  ;;  %1605 = vmatprep.mubr.bf16.mxu0 %v3040_v3 }
  0x78   : > { %2708 = vmatmul.mubr.msk.bf16.vlgmr.msra.gmra.mrb[32].mxu1 %vm268_vm1, %v2945_v54  ;;  %2714 = vmatprep.subr.msk.bf16.mxu0 %vm272_vm0, %v1747_v55 }
  0x79   : > { %1617 = vmatpush1.bf16.msra.mxu1 %v1042_v52  ;;  %1648 = vmatprep.mubr.bf16.mxu1 %v3040_v3 }
  0x7a   : > { %2716 = vmatprep.subr.msk.bf16.mxu1 %vm272_vm0, %v1748_v56 }
  0x7e   : > { %2710 = vmatmul.mubr.msk.bf16.vlgmr.msra.gmra.mrb[36].mxu0 %vm268_vm1, %v2945_v54 }
  0x7f   : > { %1794 = vmatpush1.bf16.msra.mxu0 %v1770_v57  ;;  %1825 = vmatprep.mubr.bf16.mxu0 %v3040_v3 }
  0x80   : > { %2712 = vmatmul.mubr.msk.bf16.vlgmr.msra.gmra.mrb[36].mxu1 %vm268_vm1, %v2945_v54  ;;  %2718 = vmatprep.subr.msk.bf16.mxu0 %vm272_vm0, %v1764_v58 }
  0x81   : > { %1837 = vmatpush1.bf16.msra.mxu1 %v1776_v59  ;;  %1868 = vmatprep.mubr.bf16.mxu1 %v3040_v3 }
  0x82   : > { %2720 = vmatprep.subr.msk.bf16.mxu1 %vm272_vm0, %v1765_v60 }
  0x86   : > { %2715 = vmatmul.mubr.msk.bf16.vlgmr.msra.gmra.mrb[0].mxu0 %vm268_vm1, %v2947_v61 }
  0x87   : > { %1880 = vmatpush1.bf16.msra.mxu0 %v1782_v62  ;;  %1911 = vmatprep.mubr.bf16.mxu0 %v3040_v3 }
  0x88   : > { %2717 = vmatmul.mubr.msk.bf16.vlgmr.msra.gmra.mrb[0].mxu1 %vm268_vm1, %v2947_v61  ;;  %2723 = vmatprep.subr.msk.bf16.mxu0 %vm272_vm0, %v1747_v55 }
  0x89   : > { %1923 = vmatpush1.bf16.msra.mxu1 %v1788_v63  ;;  %1954 = vmatprep.mubr.bf16.mxu1 %v3040_v3 }
  0x8a   : > { %2725 = vmatprep.subr.msk.bf16.mxu1 %vm272_vm0, %v1748_v56 }
  0x8e   : > { %2719 = vmatmul.mubr.msk.bf16.vlgmr.msra.gmra.mrb[4].mxu0 %vm268_vm1, %v2947_v61 }
  0x8f   : > { %1990 = vmatpush1.bf16.msra.mxu0 %v1770_v57  ;;  %2021 = vmatprep.mubr.bf16.mxu0 %v3040_v3 }
  0x90   : > { %2721 = vmatmul.mubr.msk.bf16.vlgmr.msra.gmra.mrb[4].mxu1 %vm268_vm1, %v2947_v61  ;;  %2727 = vmatprep.subr.msk.bf16.mxu0 %vm272_vm0, %v1764_v58 }
  0x91   : > { %2033 = vmatpush1.bf16.msra.mxu1 %v1776_v59  ;;  %2064 = vmatprep.mubr.bf16.mxu1 %v3040_v3 }
  0x92   : > { %2729 = vmatprep.subr.msk.bf16.mxu1 %vm272_vm0, %v1765_v60 }
  0x96   : > { %2724 = vmatmul.mubr.msk.bf16.vlgmr.msra.gmra.mrb[40].mxu0 %vm268_vm1, %v2949_v1 }
  0x97   : > { %2076 = vmatpush1.bf16.msra.mxu0 %v1782_v62  ;;  %2107 = vmatprep.mubr.bf16.mxu0 %v3040_v3 }
  0x98   : > { %2726 = vmatmul.mubr.msk.bf16.vlgmr.msra.gmra.mrb[40].mxu1 %vm268_vm1, %v2949_v1  ;;  %2732 = vmatprep.subr.msk.bf16.mxu0 %vm272_vm0, %v1747_v55 }
  0x99   : > { %2119 = vmatpush1.bf16.msra.mxu1 %v1788_v63  ;;  %2150 = vmatprep.mubr.bf16.mxu1 %v3040_v3 }
  0x9a   : > { %2734 = vmatprep.subr.msk.bf16.mxu1 %vm272_vm0, %v1748_v56 }
  0x9e   : > { %2728 = vmatmul.mubr.msk.bf16.vlgmr.msra.gmra.mrb[44].mxu0 %vm268_vm1, %v2949_v1 }
  0x9f   : > { %2234 = vmatpush1.bf16.msra.mxu0 %v1770_v57  ;;  %2265 = vmatprep.mubr.bf16.mxu0 %v3040_v3 }
  0xa0   : > { %2730 = vmatmul.mubr.msk.bf16.vlgmr.msra.gmra.mrb[44].mxu1 %vm268_vm1, %v2949_v1  ;;  %2736 = vmatprep.subr.msk.bf16.mxu0 %vm272_vm0, %v1764_v58 }
  0xa1   : > { %2277 = vmatpush1.bf16.msra.mxu1 %v1776_v59  ;;  %2308 = vmatprep.mubr.bf16.mxu1 %v3040_v3 }
  0xa2   : > { %2738 = vmatprep.subr.msk.bf16.mxu1 %vm272_vm0, %v1765_v60 }
  0xa6   : > { %2733 = vmatmul.mubr.msk.bf16.vlgmr.msra.gmra.mrb[48].mxu0 %vm268_vm1, %v2950_v2 }
  0xa7   : > { %2320 = vmatpush1.bf16.msra.mxu0 %v1782_v62  ;;  %2351 = vmatprep.mubr.bf16.mxu0 %v3040_v3 }
  0xa8   : > { %2735 = vmatmul.mubr.msk.bf16.vlgmr.msra.gmra.mrb[48].mxu1 %vm268_vm1, %v2950_v2 }
  0xa9   : > { %2363 = vmatpush1.bf16.msra.mxu1 %v1788_v63  ;;  %2394 = vmatprep.mubr.bf16.mxu1 %v3040_v3 }
  0xae   : > { %2737 = vmatmul.mubr.msk.bf16.vlgmr.msra.gmra.mrb[52].mxu0 %vm268_vm1, %v2950_v2 }
  0xb0   : > { %2739 = vmatmul.mubr.msk.bf16.vlgmr.msra.gmra.mrb[52].mxu1 %vm268_vm1, %v2950_v2 }
 0x109   : > { %v527_v4 = vpop.f32.mrb[8].mxu0 }
 0x10a   : > { %665 = vrot.lane.b32.xlu1 %v527_v4, %s3041_s22  ;;  %v529_v5 = vpop.f32.mrb[9].mxu0 }
 0x10b   : > { %669 = vrot.lane.b32.xlu0 %v529_v5, %s3041_s22  ;;  %v531_v6 = vpop.f32.mrb[10].mxu0  ;;  %v570_v7 = vpop.f32.mrb[8].mxu1 }
 0x10c   : > { %v533_v8 = vpop.f32.mrb[11].mxu0  ;;  %v572_v9 = vpop.f32.mrb[9].mxu1 }
 0x10d   : > { %v574_v10 = vpop.f32.mrb[10].mxu1 }
 0x10e   : > { %667 = vrot.lane.b32.xlu1 %v531_v6, %s3041_s22  ;;  %v576_v11 = vpop.f32.mrb[11].mxu1 }
 0x10f   : > { %673 = vrot.lane.b32.xlu0 %v570_v7, %s3041_s22 }
 0x111   : > { %v613_v3 = vpop.f32.mrb[12].mxu0 }
 0x112   : > { %671 = vrot.lane.b32.xlu1 %v533_v8, %s3041_s22  ;;  %v615_v12 = vpop.f32.mrb[13].mxu0 }
 0x113   : > { %677 = vrot.lane.b32.xlu0 %v572_v9, %s3041_s22  ;;  %v617_v13 = vpop.f32.mrb[14].mxu0  ;;  %v656_v14 = vpop.f32.mrb[12].mxu1 }
 0x114   : > { %v619_v15 = vpop.f32.mrb[15].mxu0  ;;  %v658_v16 = vpop.f32.mrb[13].mxu1 }
 0x115   : > { %v660_v17 = vpop.f32.mrb[14].mxu1 }
 0x116   : > { %675 = vrot.lane.b32.xlu1 %v574_v10, %s3041_s22  ;;  %v662_v18 = vpop.f32.mrb[15].mxu1 }
 0x117   : > { %681 = vrot.lane.b32.xlu0 %v613_v3, %s3041_s22 }
 0x119   : > { %v774_v19 = vpop.f32.mrb[16].mxu0 }
 0x11a   : > { %679 = vrot.lane.b32.xlu1 %v576_v11, %s3041_s22  ;;  %v776_v20 = vpop.f32.mrb[17].mxu0 }
 0x11b   : > { %685 = vrot.lane.b32.xlu0 %v615_v12, %s3041_s22  ;;  %v778_v21 = vpop.f32.mrb[18].mxu0  ;;  %v817_v22 = vpop.f32.mrb[16].mxu1 }
 0x11c   : > { %v780_v23 = vpop.f32.mrb[19].mxu0  ;;  %v819_v24 = vpop.f32.mrb[17].mxu1 }
 0x11d   : > { %v821_v25 = vpop.f32.mrb[18].mxu1 }
 0x11e   : > { %683 = vrot.lane.b32.xlu1 %v617_v13, %s3041_s22  ;;  %v823_v26 = vpop.f32.mrb[19].mxu1 }
 0x11f   : > { %689 = vrot.lane.b32.xlu0 %v656_v14, %s3041_s22 }
 0x121   : > { %v860_v27 = vpop.f32.mrb[20].mxu0 }
 0x122   : > { %687 = vrot.lane.b32.xlu1 %v619_v15, %s3041_s22  ;;  %v862_v28 = vpop.f32.mrb[21].mxu0 }
 0x123   : > { %693 = vrot.lane.b32.xlu0 %v658_v16, %s3041_s22  ;;  %v864_v29 = vpop.f32.mrb[22].mxu0  ;;  %v903_v30 = vpop.f32.mrb[20].mxu1 }
 0x124   : > { %v866_v31 = vpop.f32.mrb[23].mxu0  ;;  %v905_v32 = vpop.f32.mrb[21].mxu1 }
 0x125   : > { %v907_v33 = vpop.f32.mrb[22].mxu1 }
 0x126   : > { %691 = vrot.lane.b32.xlu1 %v660_v17, %s3041_s22  ;;  %v909_v34 = vpop.f32.mrb[23].mxu1 }
 0x127   : > { %912 = vrot.lane.b32.xlu0 %v774_v19, %s3042_s24 }
 0x12a   : > { %695 = vrot.lane.b32.xlu1 %v662_v18, %s3041_s22 }
 0x12b   : > { %916 = vrot.lane.b32.xlu0 %v776_v20, %s3042_s24 }
 0x12e   : > { %914 = vrot.lane.b32.xlu1 %v778_v21, %s3042_s24 }
 0x12f   : > { %920 = vrot.lane.b32.xlu0 %v817_v22, %s3042_s24 }
 0x132   : > { %918 = vrot.lane.b32.xlu1 %v780_v23, %s3042_s24 }
 0x133   : > { %924 = vrot.lane.b32.xlu0 %v819_v24, %s3042_s24 }
 0x136   : > { %922 = vrot.lane.b32.xlu1 %v821_v25, %s3042_s24 }
 0x137   : > { %928 = vrot.lane.b32.xlu0 %v860_v27, %s3042_s24 }
 0x139   : > { %v1277_v35 = vpop.f32.mrb[24].mxu0 }
 0x13a   : > { %926 = vrot.lane.b32.xlu1 %v823_v26, %s3042_s24  ;;  %v1279_v36 = vpop.f32.mrb[25].mxu0 }
 0x13b   : > { %932 = vrot.lane.b32.xlu0 %v862_v28, %s3042_s24  ;;  %v1281_v37 = vpop.f32.mrb[26].mxu0  ;;  %v1320_v38 = vpop.f32.mrb[24].mxu1 }
 0x13c   : > { %v1283_v39 = vpop.f32.mrb[27].mxu0  ;;  %v1322_v40 = vpop.f32.mrb[25].mxu1 }
 0x13d   : > { %v1324_v41 = vpop.f32.mrb[26].mxu1  ;;  %v3438_v28 = vpop.permute.xlu0 %217 }
 0x13e   : > { %930 = vrot.lane.b32.xlu1 %v864_v29, %s3042_s24  ;;  %v1326_v42 = vpop.f32.mrb[27].mxu1 }
 0x13f   : > { %936 = vrot.lane.b32.xlu0 %v903_v30, %s3042_s24 }
 0x141   : > { %v1363_v43 = vpop.f32.mrb[28].mxu0 }
 0x142   : > { %934 = vrot.lane.b32.xlu1 %v866_v31, %s3042_s24  ;;  %v1365_v44 = vpop.f32.mrb[29].mxu0 }
 0x143   : > { %940 = vrot.lane.b32.xlu0 %v905_v32, %s3042_s24  ;;  %v1367_v45 = vpop.f32.mrb[30].mxu0  ;;  %v1406_v46 = vpop.f32.mrb[28].mxu1 }
 0x144   : > { %v1369_v47 = vpop.f32.mrb[31].mxu0  ;;  %v1408_v48 = vpop.f32.mrb[29].mxu1 }
 0x145   : > { %v1410_v49 = vpop.f32.mrb[30].mxu1 }
 0x146   : > { %938 = vrot.lane.b32.xlu1 %v907_v33, %s3042_s24  ;;  %v1412_v50 = vpop.f32.mrb[31].mxu1 }
 0x147   : > { %1415 = vrot.lane.b32.xlu0 %v1277_v35, %s3041_s22 }
 0x149   : > { %v1521_v51 = vpop.f32.mrb[32].mxu0 }
 0x14a   : > { %942 = vrot.lane.b32.xlu1 %v909_v34, %s3042_s24  ;;  %v1523_v52 = vpop.f32.mrb[33].mxu0 }
 0x14b   : > { %1419 = vrot.lane.b32.xlu0 %v1279_v36, %s3041_s22  ;;  %v1525_v53 = vpop.f32.mrb[34].mxu0  ;;  %v1564_v54 = vpop.f32.mrb[32].mxu1 }
 0x14c   : > { %v1527_v55 = vpop.f32.mrb[35].mxu0  ;;  %v1566_v56 = vpop.f32.mrb[33].mxu1 }
 0x14d   : > { %v1568_v57 = vpop.f32.mrb[34].mxu1 }
 0x14e   : > { %1417 = vrot.lane.b32.xlu1 %v1281_v37, %s3041_s22  ;;  %v3359_v58 = vpop.f32.mrb[35].mxu1  ;;  %v3460_v37 = vand.u32 127, %v238_v0 }
 0x14f   : > { %1423 = vrot.lane.b32.xlu0 %v1320_v38, %s3041_s22  ;;  %v3463_v38 = vpop.permute.xlu0 %222 }
 0x150   : > { %vm699_vm2 = vcmp.lt.s32.totalorder %v3460_v37, 127  ;;  %vm944_vm3 = vcmp.lt.s32.totalorder %v3460_v37, 126 }
 0x151   : > { %v1607_v59 = vpop.f32.mrb[36].mxu0 }
 0x152   : > { %1421 = vrot.lane.b32.xlu1 %v1283_v39, %s3041_s22  ;;  %v3363_v60 = vpop.f32.mrb[37].mxu0 }
 0x153   : > { %1427 = vrot.lane.b32.xlu0 %v1322_v40, %s3041_s22  ;;  %v3366_v61 = vpop.f32.mrb[38].mxu0  ;;  %v3368_v62 = vpop.f32.mrb[36].mxu1 }
 0x154   : > { %v3370_v63 = vpop.f32.mrb[39].mxu0  ;;  %v3372_v1 = vpop.f32.mrb[37].mxu1 }
 0x155   : > { %v3374_v2 = vpop.f32.mrb[38].mxu1 }
 0x156   : > { %1425 = vrot.lane.b32.xlu1 %v1324_v41, %s3041_s22  ;;  %v3377_v4 = vpop.f32.mrb[39].mxu1 }
 0x157   : > { %1431 = vrot.lane.b32.xlu0 %v1363_v43, %s3041_s22 }
 0x159   : > { %v3380_v5 = vpop.f32.mrb[0].mxu0 }
 0x15a   : > { %v3382_v6 = vpop.f32.mrb[1].mxu0  ;;  %1429 = vrot.lane.b32.xlu1 %v1326_v42, %s3041_s22 }
 0x15b   : > { %v3385_v7 = vpop.f32.mrb[2].mxu0  ;;  %1435 = vrot.lane.b32.xlu0 %v1365_v44, %s3041_s22  ;;  %v3388_v8 = vpop.f32.mrb[0].mxu1 }
 0x15c   : > { %v3390_v9 = vpop.f32.mrb[3].mxu0  ;;  %v3392_v10 = vpop.f32.mrb[1].mxu1 }
 0x15d   : > { %v3394_v11 = vpop.f32.mrb[2].mxu1 }
 0x15e   : > { %1433 = vrot.lane.b32.xlu1 %v1367_v45, %s3041_s22  ;;  %v3397_v3 = vpop.f32.mrb[3].mxu1 }
 0x15f   : > { %1439 = vrot.lane.b32.xlu0 %v1406_v46, %s3041_s22 }
 0x161   : > { %v3400_v12 = vpop.f32.mrb[4].mxu0 }
 0x162   : > { %v3402_v13 = vpop.f32.mrb[5].mxu0  ;;  %1437 = vrot.lane.b32.xlu1 %v1369_v47, %s3041_s22 }
 0x163   : > { %v3405_v14 = vpop.f32.mrb[6].mxu0  ;;  %1443 = vrot.lane.b32.xlu0 %v1408_v48, %s3041_s22  ;;  %v3408_v15 = vpop.f32.mrb[4].mxu1 }
 0x164   : > { %v3410_v16 = vpop.f32.mrb[7].mxu0  ;;  %v3412_v17 = vpop.f32.mrb[5].mxu1 }
 0x165   : > { %3951 = vst [vmem:[#allocation3_spill] sm:$0xff] %v3410_v16  ;;  %v3414_v18 = vpop.f32.mrb[6].mxu1 }
 0x166   : > { %3952 = vst [vmem:[#allocation4_spill] sm:$0xff] %v3414_v18  ;;  %1441 = vrot.lane.b32.xlu1 %v1410_v49, %s3041_s22  ;;  %v3417_v19 = vpop.f32.mrb[7].mxu1 }
 0x167   : > { %3953 = vst [vmem:[#allocation5_spill] sm:$0xff] %v3417_v19  ;;  %1659 = vrot.lane.b32.xlu0 %v1521_v51, %s3042_s24 }
 0x169   : > { %v2023_v20 = vpop.f32.mrb[40].mxu0 }
 0x16a   : > { %1445 = vrot.lane.b32.xlu1 %v1412_v50, %s3041_s22  ;;  %v3421_v21 = vpop.f32.mrb[41].mxu0 }
 0x16b   : > { %1663 = vrot.lane.b32.xlu0 %v1523_v52, %s3042_s24  ;;  %v3424_v22 = vpop.f32.mrb[42].mxu0  ;;  %v3426_v23 = vpop.f32.mrb[40].mxu1 }
 0x16c   : > { %v3428_v24 = vpop.f32.mrb[43].mxu0  ;;  %v3430_v25 = vpop.f32.mrb[41].mxu1 }
 0x16d   : > { %v3432_v26 = vpop.f32.mrb[42].mxu1 }
 0x16e   : > { %1661 = vrot.lane.b32.xlu1 %v1525_v53, %s3042_s24  ;;  %v3435_v27 = vpop.f32.mrb[43].mxu1 }
 0x16f   : > { %1667 = vrot.lane.b32.xlu0 %v1564_v54, %s3042_s24 }
 0x171   : > { %v3440_v29 = vpop.f32.mrb[44].mxu0 }
 0x172   : > { %1665 = vrot.lane.b32.xlu1 %v1527_v55, %s3042_s24  ;;  %v3443_v30 = vpop.f32.mrb[45].mxu0 }
 0x173   : > { %1671 = vrot.lane.b32.xlu0 %v1566_v56, %s3042_s24  ;;  %v3446_v31 = vpop.f32.mrb[46].mxu0  ;;  %v3448_v32 = vpop.f32.mrb[44].mxu1 }
 0x174   : > { %v3450_v33 = vpop.f32.mrb[47].mxu0  ;;  %v3452_v34 = vpop.f32.mrb[45].mxu1 }
 0x175   : > { %v3454_v35 = vpop.f32.mrb[46].mxu1 }
 0x176   : > { %1669 = vrot.lane.b32.xlu1 %v1568_v57, %s3042_s24  ;;  %v3457_v36 = vpop.f32.mrb[47].mxu1 }
 0x177   : > { %1675 = vrot.lane.b32.xlu0 %v1607_v59, %s3042_s24 }
 0x179   : > { %v3465_v39 = vpop.f32.mrb[48].mxu0 }
 0x17a   : > { %1673 = vrot.lane.b32.xlu1 %v3359_v58, %s3042_s24  ;;  %v3469_v40 = vpop.f32.mrb[49].mxu0 }
 0x17b   : > { %1679 = vrot.lane.b32.xlu0 %v3363_v60, %s3042_s24  ;;  %v3474_v41 = vpop.f32.mrb[50].mxu0  ;;  %v3476_v0 = vpop.f32.mrb[48].mxu1 }
 0x17c   : > { %v666_v42 = vpop.permute.xlu1 %665  ;;  %v3478_v43 = vpop.f32.mrb[51].mxu0 }
 0x17d   : > { %v670_v44 = vpop.permute.xlu0 %669  ;;  %v3480_v45 = vpop.f32.mrb[49].mxu1 }
 0x17e   : > { %v712_v46 = vsel %vm699_vm2, %v666_v42, %v670_v44  ;;  %1677 = vrot.lane.b32.xlu1 %v3366_v61, %s3042_s24  ;;  %v3486_v47 = vpop.f32.mrb[50].mxu1 }
 0x17f   : > { %1683 = vrot.lane.b32.xlu0 %v3368_v62, %s3042_s24  ;;  %v3490_v48 = vpop.f32.mrb[51].mxu1 }
 0x180   : > { %v668_v49 = vpop.permute.xlu1 %667 }
 0x181   : > { %v674_v50 = vpop.permute.xlu0 %673  ;;  %v3492_v51 = vpop.f32.mrb[52].mxu0 }
 0x182   : > { %v3496_v52 = vsel %vm699_vm2, %v670_v44, %v674_v50  ;;  %1681 = vrot.lane.b32.xlu1 %v3370_v63, %s3042_s24  ;;  %v3500_v53 = vpop.f32.mrb[53].mxu0 }
 0x183   : > { %1687 = vrot.lane.b32.xlu0 %v3372_v1, %s3042_s24  ;;  %v3504_v54 = vpop.f32.mrb[54].mxu0  ;;  %v3506_v55 = vpop.f32.mrb[52].mxu1 }
 0x184   : > { %v672_v56 = vpop.permute.xlu1 %671  ;;  %v3508_v57 = vpop.f32.mrb[55].mxu0 }
 0x185   : > { %v713_v58 = vsel %vm699_vm2, %v668_v49, %v672_v56  ;;  %v678_v59 = vpop.permute.xlu0 %677  ;;  %v3512_v60 = vpop.f32.mrb[53].mxu1 }
 0x186   : > { %v3515_v61 = vadd.f32 %v713_v58, %v3463_v38  ;;  %v708_v62 = vsel %vm699_vm2, %v674_v50, %v678_v59  ;;  %1685 = vrot.lane.b32.xlu1 %v3374_v2, %s3042_s24  ;;  %v3521_v63 = vpop.f32.mrb[54].mxu1 }
 0x187   : > { %2161 = vrot.lane.b32.xlu0 %v2023_v20, %s3041_s22  ;;  %v3524_v1 = vpop.f32.mrb[55].mxu1 }
 0x188   : > { %v676_v44 = vpop.permute.xlu1 %675 }
 0x189   : > { %v711_v19 = vsel %vm699_vm2, %v672_v56, %v676_v44  ;;  %v682_v18 = vpop.permute.xlu0 %681 }
 0x18a   : > { %v3529_v58 = vadd.f32 %v711_v19, %v3463_v38  ;;  %v706_v50 = vsel %vm699_vm2, %v678_v59, %v682_v18  ;;  %1689 = vrot.lane.b32.xlu1 %v3377_v4, %s3042_s24 }
 0x18b   : > { %2165 = vrot.lane.b32.xlu0 %v3421_v21, %s3041_s22 }
 0x18c   : > { %v680_v2 = vpop.permute.xlu1 %679 }
 0x18d   : > { %v709_v20 = vsel %vm699_vm2, %v676_v44, %v680_v2  ;;  %v686_v16 = vpop.permute.xlu0 %685 }
 0x18e   : > { %v3540_v56 = vadd.f32 %v709_v20, %v3463_v38  ;;  %v704_v19 = vsel %vm699_vm2, %v682_v18, %v686_v16  ;;  %2163 = vrot.lane.b32.xlu1 %v3424_v22, %s3041_s22 }
 0x18f   : > { %2169 = vrot.lane.b32.xlu0 %v3426_v23, %s3041_s22 }
 0x190   : > { %v684_v4 = vpop.permute.xlu1 %683 }
 0x191   : > { %v707_v21 = vsel %vm699_vm2, %v680_v2, %v684_v4  ;;  %v690_v59 = vpop.permute.xlu0 %689 }
 0x192   : > { %v3551_v44 = vadd.f32 %v707_v21, %v3463_v38  ;;  %v3555_v20 = vsel %vm699_vm2, %v686_v16, %v690_v59  ;;  %2167 = vrot.lane.b32.xlu1 %v3428_v24, %s3041_s22 }
 0x193   : > { %2173 = vrot.lane.b32.xlu0 %v3430_v25, %s3041_s22 }
 0x194   : > { %v688_v18 = vpop.permute.xlu1 %687 }
 0x195   : > { %v705_v22 = vsel %vm699_vm2, %v684_v4, %v688_v18  ;;  %v694_v23 = vpop.permute.xlu0 %693 }
 0x196   : > { %v3564_v2 = vadd.f32 %v705_v22, %v3463_v38  ;;  %v3568_v21 = vsel %vm699_vm2, %v690_v59, %v694_v23  ;;  %v3572_v16 = vsel %vm699_vm2, %v694_v23, %v666_v42  ;;  %2171 = vrot.lane.b32.xlu1 %v3432_v26, %s3041_s22 }
 0x197   : > { %2177 = vrot.lane.b32.xlu0 %v3440_v29, %s3041_s22  ;;  %v2762_v29 = vadd.f32 %v712_v46, %v3438_v28 }
 0x198   : > { %v692_v24 = vpop.permute.xlu1 %691 }
 0x199   : > { %v703_v25 = vsel %vm699_vm2, %v688_v18, %v692_v24  ;;  %v3580_v4 = vpop.permute.xlu0 %912 }
 0x19a   : > { %v3583_v22 = vadd.f32 %v703_v25, %v3463_v38  ;;  %2175 = vrot.lane.b32.xlu1 %v3435_v27, %s3041_s22 }
 0x19b   : > { %2181 = vrot.lane.b32.xlu0 %v3443_v30, %s3041_s22 }
 0x19c   : > { %v696_v26 = vpop.permute.xlu1 %695 }
 0x19d   : > { %v701_v42 = vsel %vm699_vm2, %v692_v24, %v696_v26  ;;  %v715_v59 = vsel %vm699_vm2, %v696_v26, %v668_v49  ;;  %v917_v18 = vpop.permute.xlu0 %916  ;;  %v2767_v24 = vadd.f32 %v3496_v52, %v3438_v28 }
 0x19e   : > { %v3596_v23 = vadd.f32 %v701_v42, %v3463_v38  ;;  %v3599_v27 = vadd.f32 %v715_v59, %v3463_v38  ;;  %v957_v30 = vsel %vm944_vm3, %v3580_v4, %v917_v18  ;;  %2179 = vrot.lane.b32.xlu1 %v3446_v31, %s3041_s22 }
 0x19f   : > { %v3606_v46 = vadd.f32 %v2762_v29, %v957_v30  ;;  %2185 = vrot.lane.b32.xlu0 %v3448_v32, %s3041_s22  ;;  %v2782_v32 = vadd.f32 %v708_v62, %v3438_v28  ;;  %v2787_v62 = vadd.f32 %v706_v50, %v3438_v28  ;;  %v2802_v50 = vadd.f32 %v704_v19, %v3438_v28 }
 0x1a0   : > { %v3610_v49 = vpop.permute.xlu1 %914  ;;  %v2807_v19 = vadd.f32 %v3555_v20, %v3438_v28  ;;  %v2822_v20 = vadd.f32 %v3568_v21, %v3438_v28 }
 0x1a1   : > { %v921_v25 = vpop.permute.xlu0 %920 }
 0x1a2   : > { %v955_v38 = vsel %vm944_vm3, %v917_v18, %v921_v25  ;;  %2183 = vrot.lane.b32.xlu1 %v3450_v33, %s3041_s22 }
 0x1a3   : > { %v3618_v26 = vadd.f32 %v2767_v24, %v955_v38  ;;  %2189 = vrot.lane.b32.xlu0 %v3452_v34, %s3041_s22 }
 0x1a4   : > { %v919_v31 = vpop.permute.xlu1 %918 }
 0x1a5   : > { %v958_v29 = vsel %vm944_vm3, %v3610_v49, %v919_v31  ;;  %v925_v52 = vpop.permute.xlu0 %924 }
 0x1a6   : > { %v3627_v42 = vadd.f32 %v3515_v61, %v958_v29  ;;  %v953_v59 = vsel %vm944_vm3, %v921_v25, %v925_v52  ;;  %2187 = vrot.lane.b32.xlu1 %v3454_v35, %s3041_s22 }
 0x1a7   : > { %v3633_v33 = vadd.f32 %v2782_v32, %v953_v59  ;;  %2405 = vrot.lane.b32.xlu0 %v3465_v39, %s3042_s24  ;;  %v2827_v59 = vadd.f32 %v3572_v16, %v3438_v28 }
 0x1a8   : > { %v923_v34 = vpop.permute.xlu1 %922 }
 0x1a9   : > { %v956_v18 = vsel %vm944_vm3, %v919_v31, %v923_v34  ;;  %v929_v30 = vpop.permute.xlu0 %928 }
 0x1aa   : > { %v3641_v61 = vadd.f32 %v3529_v58, %v956_v18  ;;  %v951_v24 = vsel %vm944_vm3, %v925_v52, %v929_v30  ;;  %2191 = vrot.lane.b32.xlu1 %v3457_v36, %s3041_s22 }
 0x1ab   : > { %v3647_v35 = vadd.f32 %v2787_v62, %v951_v24  ;;  %2409 = vrot.lane.b32.xlu0 %v3469_v40, %s3042_s24 }
 0x1ac   : > { %v927_v39 = vpop.permute.xlu1 %926 }
 0x1ad   : > { %v954_v25 = vsel %vm944_vm3, %v923_v34, %v927_v39  ;;  %v933_v38 = vpop.permute.xlu0 %932 }
 0x1ae   : > { %v3655_v58 = vadd.f32 %v3540_v56, %v954_v25  ;;  %v949_v31 = vsel %vm944_vm3, %v929_v30, %v933_v38  ;;  %2407 = vrot.lane.b32.xlu1 %v3474_v41, %s3042_s24 }
 0x1af   : > { %v3661_v36 = vadd.f32 %v2802_v50, %v949_v31  ;;  %2413 = vrot.lane.b32.xlu0 %v3476_v0, %s3042_s24 }
 0x1b0   : > { %v931_v40 = vpop.permute.xlu1 %930 }
 0x1b1   : > { %v952_v32 = vsel %vm944_vm3, %v927_v39, %v931_v40  ;;  %v937_v56 = vpop.permute.xlu0 %936 }
 0x1b2   : > { %v2798_v29 = vadd.f32 %v3551_v44, %v952_v32  ;;  %v947_v52 = vsel %vm944_vm3, %v933_v38, %v937_v56  ;;  %2411 = vrot.lane.b32.xlu1 %v3478_v43, %s3042_s24 }
 0x1b3   : > { %v2808_v41 = vadd.f32 %v2807_v19, %v947_v52  ;;  %2417 = vrot.lane.b32.xlu0 %v3480_v45, %s3042_s24 }
 0x1b4   : > { %v935_v0 = vpop.permute.xlu1 %934 }
 0x1b5   : > { %v950_v44 = vsel %vm944_vm3, %v931_v40, %v935_v0  ;;  %v941_v34 = vpop.permute.xlu0 %940 }
 0x1b6   : > { %v2813_v62 = vadd.f32 %v3564_v2, %v950_v44  ;;  %v945_v43 = vsel %vm944_vm3, %v937_v56, %v941_v34  ;;  %v959_v45 = vsel %vm944_vm3, %v941_v34, %v3580_v4  ;;  %2415 = vrot.lane.b32.xlu1 %v3486_v47, %s3042_s24 }
 0x1b7   : > { %v2823_v21 = vadd.f32 %v2822_v20, %v945_v43  ;;  %v2828_v18 = vadd.f32 %v2827_v59, %v959_v45  ;;  %2421 = vrot.lane.b32.xlu0 %v3492_v51, %s3042_s24 }
 0x1b8   : > { %v939_v28 = vpop.permute.xlu1 %938 }
 0x1b9   : > { %v948_v16 = vsel %vm944_vm3, %v935_v0, %v939_v28  ;;  %v1416_v2 = vpop.permute.xlu0 %1415 }
 0x1ba   : > { %v2818_v30 = vadd.f32 %v3583_v22, %v948_v16  ;;  %2419 = vrot.lane.b32.xlu1 %v3490_v48, %s3042_s24 }
 0x1bb   : > { %2425 = vrot.lane.b32.xlu0 %v3500_v53, %s3042_s24 }
 0x1bc   : > { %v943_v4 = vpop.permute.xlu1 %942 }
 0x1bd   : > { %v946_v47 = vsel %vm944_vm3, %v939_v28, %v943_v4  ;;  %v960_v51 = vsel %vm944_vm3, %v943_v4, %v3610_v49  ;;  %v1420_v24 = vpop.permute.xlu0 %1419 }
 0x1be   : > { %v2833_v39 = vadd.f32 %v3596_v23, %v946_v47  ;;  %v2838_v50 = vadd.f32 %v3599_v27, %v960_v51  ;;  %v1459_v22 = vsel %vm699_vm2, %v1416_v2, %v1420_v24  ;;  %2423 = vrot.lane.b32.xlu1 %v3504_v54, %s3042_s24 }
 0x1bf   : > { %v2764_v48 = vadd.f32 %v3606_v46, %v1459_v22  ;;  %2429 = vrot.lane.b32.xlu0 %v3506_v55, %s3042_s24 }
 0x1c0   : > { %v1418_v53 = vpop.permute.xlu1 %1417 }
 0x1c1   : > { %v1424_v25 = vpop.permute.xlu0 %1423 }
 0x1c2   : > { %v1457_v49 = vsel %vm699_vm2, %v1420_v24, %v1424_v25  ;;  %2427 = vrot.lane.b32.xlu1 %v3508_v57, %s3042_s24 }
 0x1c3   : > { %v2769_v23 = vadd.f32 %v3618_v26, %v1457_v49  ;;  %2433 = vrot.lane.b32.xlu0 %v3512_v60, %s3042_s24 }
 0x1c4   : > { %v1422_v27 = vpop.permute.xlu1 %1421 }
 0x1c5   : > { %v1460_v54 = vsel %vm699_vm2, %v1418_v53, %v1422_v27  ;;  %v1428_v46 = vpop.permute.xlu0 %1427 }
 0x1c6   : > { %v2774_v55 = vadd.f32 %v3627_v42, %v1460_v54  ;;  %v1455_v38 = vsel %vm699_vm2, %v1424_v25, %v1428_v46  ;;  %2431 = vrot.lane.b32.xlu1 %v3521_v63, %s3042_s24 }
 0x1c7   : > { %v2784_v57 = vadd.f32 %v3633_v33, %v1455_v38 }
 0x1c8   : > { %v1426_v31 = vpop.permute.xlu1 %1425 }
 0x1c9   : > { %v1458_v26 = vsel %vm699_vm2, %v1422_v27, %v1426_v31  ;;  %v1432_v60 = vpop.permute.xlu0 %1431 }
 0x1ca   : > { %v2779_v40 = vadd.f32 %v3641_v61, %v1458_v26  ;;  %v1453_v19 = vsel %vm699_vm2, %v1428_v46, %v1432_v60  ;;  %2435 = vrot.lane.b32.xlu1 %v3524_v1, %s3042_s24 }
 0x1cb   : > { %v2789_v42 = vadd.f32 %v3647_v35, %v1453_v19 }
 0x1cc   : > { %v1430_v32 = vpop.permute.xlu1 %1429 }
 0x1cd   : > { %v1456_v63 = vsel %vm699_vm2, %v1426_v31, %v1430_v32  ;;  %v1436_v33 = vpop.permute.xlu0 %1435 }
 0x1ce   : > { %v2794_v56 = vadd.f32 %v3655_v58, %v1456_v63  ;;  %v1451_v52 = vsel %vm699_vm2, %v1432_v60, %v1436_v33 }
 0x1cf   : > { %v2804_v61 = vadd.f32 %v3661_v36, %v1451_v52 }
 0x1d0   : > { %v1434_v0 = vpop.permute.xlu1 %1433 }
 0x1d1   : > { %v1454_v20 = vsel %vm699_vm2, %v1430_v32, %v1434_v0  ;;  %v1440_v59 = vpop.permute.xlu0 %1439 }
 0x1d2   : > { %v2799_v1 = vadd.f32 %v2798_v29, %v1454_v20  ;;  %v1449_v35 = vsel %vm699_vm2, %v1436_v33, %v1440_v59 }
 0x1d3   : > { %v2809_v44 = vadd.f32 %v2808_v41, %v1449_v35 }
 0x1d4   : > { %v1438_v34 = vpop.permute.xlu1 %1437 }
 0x1d5   : > { %v1452_v43 = vsel %vm699_vm2, %v1434_v0, %v1438_v34  ;;  %v1444_v58 = vpop.permute.xlu0 %1443 }
 0x1d6   : > { %v2814_v45 = vadd.f32 %v2813_v62, %v1452_v43  ;;  %v1447_v28 = vsel %vm699_vm2, %v1440_v59, %v1444_v58  ;;  %v1461_v36 = vsel %vm699_vm2, %v1444_v58, %v1416_v2 }
 0x1d7   : > { %v2824_v16 = vadd.f32 %v2823_v21, %v1447_v28  ;;  %v2829_v4 = vadd.f32 %v2828_v18, %v1461_v36 }
 0x1d8   : > { %v1442_v47 = vpop.permute.xlu1 %1441 }
 0x1d9   : > { %v1450_v29 = vsel %vm699_vm2, %v1438_v34, %v1442_v47  ;;  %v1660_v51 = vpop.permute.xlu0 %1659 }
 0x1da   : > { %v2819_v41 = vadd.f32 %v2818_v30, %v1450_v29 }
 0x1dc   : > { %v1446_v24 = vpop.permute.xlu1 %1445 }
 0x1dd   : > { %v1448_v22 = vsel %vm699_vm2, %v1442_v47, %v1446_v24  ;;  %v1462_v62 = vsel %vm699_vm2, %v1446_v24, %v1418_v53  ;;  %v1664_v25 = vpop.permute.xlu0 %1663 }
 0x1de   : > { %v2834_v49 = vadd.f32 %v2833_v39, %v1448_v22  ;;  %v2839_v27 = vadd.f32 %v2838_v50, %v1462_v62  ;;  %v1703_v21 = vsel %vm944_vm3, %v1660_v51, %v1664_v25 }
 0x1df   : > { %v2765_v18 = vadd.f32 %v2764_v48, %v1703_v21 }
 0x1e0   : > { %v1662_v2 = vpop.permute.xlu1 %1661 }
 0x1e1   : > { %v1668_v54 = vpop.permute.xlu0 %1667  ;;  %v2766_v46 = vadd.f32 %v2765_v18, %v3380_v5 }
 0x1e2   : > { %v1701_v30 = vsel %vm944_vm3, %v1664_v25, %v1668_v54 }
 0x1e3   : > { %v2770_v38 = vadd.f32 %v2769_v23, %v1701_v30 }
 0x1e4   : > { %v1666_v31 = vpop.permute.xlu1 %1665 }
 0x1e5   : > { %v1704_v26 = vsel %vm944_vm3, %v1662_v2, %v1666_v31  ;;  %v1672_v53 = vpop.permute.xlu0 %1671  ;;  %v2771_v39 = vadd.f32 %v2770_v38, %v3382_v6 }
 0x1e6   : > { %v2775_v50 = vadd.f32 %v2774_v55, %v1704_v26  ;;  %v1699_v60 = vsel %vm944_vm3, %v1668_v54, %v1672_v53  ;;  %v3954_v54 = vld [vmem:[#allocation3_spill] sm:$0xff] }
 0x1e7   : > { %v2785_v48 = vadd.f32 %v2784_v57, %v1699_v60 }
 0x1e8   : > { %v1670_v19 = vpop.permute.xlu1 %1669  ;;  %v2776_v32 = vadd.f32 %v2775_v50, %v3385_v7 }
 0x1e9   : > { %v1702_v5 = vsel %vm944_vm3, %v1666_v31, %v1670_v19  ;;  %v1676_v63 = vpop.permute.xlu0 %1675  ;;  %v2786_v23 = vadd.f32 %v2785_v48, %v3388_v8 }
 0x1ea   : > { %v2780_v33 = vadd.f32 %v2779_v40, %v1702_v5  ;;  %v1697_v52 = vsel %vm944_vm3, %v1672_v53, %v1676_v63  ;;  %v3955_v53 = vld [vmem:[#allocation4_spill] sm:$0xff] }
 0x1eb   : > { %v2790_v0 = vadd.f32 %v2789_v42, %v1697_v52 }
 0x1ec   : > { %v1674_v6 = vpop.permute.xlu1 %1673  ;;  %v2781_v55 = vadd.f32 %v2780_v33, %v3390_v9 }
 0x1ed   : > { %v1700_v57 = vsel %vm944_vm3, %v1670_v19, %v1674_v6  ;;  %v1680_v20 = vpop.permute.xlu0 %1679  ;;  %v2791_v7 = vadd.f32 %v2790_v0, %v3392_v10 }
 0x1ee   : > { %v2795_v59 = vadd.f32 %v2794_v56, %v1700_v57  ;;  %v1695_v35 = vsel %vm944_vm3, %v1676_v63, %v1680_v20 }
 0x1ef   : > { %v2805_v34 = vadd.f32 %v2804_v61, %v1695_v35 }
 0x1f0   : > { %v1678_v8 = vpop.permute.xlu1 %1677  ;;  %v2796_v40 = vadd.f32 %v2795_v59, %v3394_v11 }
 0x1f1   : > { %v1698_v42 = vsel %vm944_vm3, %v1674_v6, %v1678_v8  ;;  %v1684_v43 = vpop.permute.xlu0 %1683  ;;  %v2806_v9 = vadd.f32 %v2805_v34, %v3400_v12 }
 0x1f2   : > { %v2800_v58 = vadd.f32 %v2799_v1, %v1698_v42  ;;  %v1693_v28 = vsel %vm944_vm3, %v1680_v20, %v1684_v43 }
 0x1f3   : > { %v2810_v36 = vadd.f32 %v2809_v44, %v1693_v28 }
 0x1f4   : > { %v1682_v10 = vpop.permute.xlu1 %1681  ;;  %v2801_v56 = vadd.f32 %v2800_v58, %v3397_v3 }
 0x1f5   : > { %v1696_v61 = vsel %vm944_vm3, %v1678_v8, %v1682_v10  ;;  %v1688_v47 = vpop.permute.xlu0 %1687  ;;  %v2811_v11 = vadd.f32 %v2810_v36, %v3402_v13 }
 0x1f6   : > { %v2815_v29 = vadd.f32 %v2814_v45, %v1696_v61  ;;  %v1691_v24 = vsel %vm944_vm3, %v1684_v43, %v1688_v47  ;;  %v1705_v12 = vsel %vm944_vm3, %v1688_v47, %v1660_v51 }
 0x1f7   : > { %v2825_v1 = vadd.f32 %v2824_v16, %v1691_v24  ;;  %v2830_v22 = vadd.f32 %v2829_v4, %v1705_v12 }
 0x1f8   : > { %v1686_v62 = vpop.permute.xlu1 %1685  ;;  %v2816_v44 = vadd.f32 %v2815_v29, %v3405_v14 }
 0x1f9   : > { %v1694_v3 = vsel %vm944_vm3, %v1682_v10, %v1686_v62  ;;  %v2162_v25 = vpop.permute.xlu0 %2161  ;;  %v2826_v21 = vadd.f32 %v2825_v1, %v3408_v15  ;;  %v2831_v13 = vadd.f32 %v2830_v22, %v3412_v17 }
 0x1fa   : > { %v2820_v45 = vadd.f32 %v2819_v41, %v1694_v3  ;;  %v3956_v41 = vld [vmem:[#allocation5_spill] sm:$0xff] }
 0x1fc   : > { %v1690_v18 = vpop.permute.xlu1 %1689  ;;  %v2821_v30 = vadd.f32 %v2820_v45, %v3954_v54 }
 0x1fd   : > { %v1692_v51 = vsel %vm944_vm3, %v1686_v62, %v1690_v18  ;;  %v1706_v16 = vsel %vm944_vm3, %v1690_v18, %v1662_v2  ;;  %v2166_v4 = vpop.permute.xlu0 %2165 }
 0x1fe   : > { %v2835_v14 = vadd.f32 %v2834_v49, %v1692_v51  ;;  %v2840_v38 = vadd.f32 %v2839_v27, %v1706_v16  ;;  %v2205_v31 = vsel %vm699_vm2, %v2162_v25, %v2166_v4 }
 0x1ff   : > { %v2209_v26 = vadd.f32 %v2766_v46, %v2205_v31 }
 0x200   : > { %v2164_v15 = vpop.permute.xlu1 %2163  ;;  %v2836_v17 = vadd.f32 %v2835_v14, %v3955_v53  ;;  %v2841_v50 = vadd.f32 %v2840_v38, %v3956_v41 }
 0x201   : > { %v2170_v60 = vpop.permute.xlu0 %2169 }
 0x202   : > { %v2203_v48 = vsel %vm699_vm2, %v2166_v4, %v2170_v60 }
 0x203   : > { %v2210_v19 = vadd.f32 %v2771_v39, %v2203_v48 }
 0x204   : > { %v2168_v5 = vpop.permute.xlu1 %2167 }
 0x205   : > { %v2206_v2 = vsel %vm699_vm2, %v2164_v15, %v2168_v5  ;;  %v2174_v49 = vpop.permute.xlu0 %2173 }
 0x206   : > { %v2217_v27 = vadd.f32 %v2776_v32, %v2206_v2  ;;  %v2201_v63 = vsel %vm699_vm2, %v2170_v60, %v2174_v49 }
 0x207   : > { %v2211_v46 = vadd.f32 %v2786_v23, %v2201_v63 }
 0x208   : > { %v2172_v33 = vpop.permute.xlu1 %2171 }
 0x209   : > { %v2204_v52 = vsel %vm699_vm2, %v2168_v5, %v2172_v33  ;;  %v2178_v0 = vpop.permute.xlu0 %2177 }
 0x20a   : > { %v2218_v6 = vadd.f32 %v2781_v55, %v2204_v52  ;;  %v2199_v57 = vsel %vm699_vm2, %v2174_v49, %v2178_v0 }
 0x20b   : > { %v2212_v39 = vadd.f32 %v2791_v7, %v2199_v57 }
 0x20c   : > { %v2176_v20 = vpop.permute.xlu1 %2175 }
 0x20d   : > { %v2202_v59 = vsel %vm699_vm2, %v2172_v33, %v2176_v20  ;;  %v2182_v35 = vpop.permute.xlu0 %2181 }
 0x20e   : > { %v2219_v32 = vadd.f32 %v2796_v40, %v2202_v59  ;;  %v2197_v34 = vsel %vm699_vm2, %v2178_v0, %v2182_v35 }
 0x20f   : > { %v2213_v23 = vadd.f32 %v2806_v9, %v2197_v34 }
 0x210   : > { %v2180_v8 = vpop.permute.xlu1 %2179 }
 0x211   : > { %v2200_v42 = vsel %vm699_vm2, %v2176_v20, %v2180_v8  ;;  %v2186_v43 = vpop.permute.xlu0 %2185 }
 0x212   : > { %v2220_v55 = vadd.f32 %v2801_v56, %v2200_v42  ;;  %v2195_v58 = vsel %vm699_vm2, %v2182_v35, %v2186_v43 }
 0x213   : > { %v3826_v7 = vadd.f32 %v2811_v11, %v2195_v58 }
 0x214   : > { %v2184_v28 = vpop.permute.xlu1 %2183 }
 0x215   : > { %v2198_v36 = vsel %vm699_vm2, %v2180_v8, %v2184_v28  ;;  %v2190_v40 = vpop.permute.xlu0 %2189 }
 0x216   : > { %v3830_v10 = vadd.f32 %v2816_v44, %v2198_v36  ;;  %v2193_v9 = vsel %vm699_vm2, %v2186_v43, %v2190_v40  ;;  %v2207_v61 = vsel %vm699_vm2, %v2190_v40, %v2162_v25 }
 0x217   : > { %v3836_v47 = vadd.f32 %v2826_v21, %v2193_v9  ;;  %v3838_v56 = vadd.f32 %v2831_v13, %v2207_v61 }
 0x218   : > { %v2188_v29 = vpop.permute.xlu1 %2187 }
 0x219   : > { %v2196_v11 = vsel %vm699_vm2, %v2184_v28, %v2188_v29  ;;  %v3842_v24 = vpop.permute.xlu0 %2405 }
 0x21a   : > { %v3844_v12 = vadd.f32 %v2821_v30, %v2196_v11 }
 0x21c   : > { %v2192_v1 = vpop.permute.xlu1 %2191 }
 0x21d   : > { %v2194_v22 = vsel %vm699_vm2, %v2188_v29, %v2192_v1  ;;  %v2208_v62 = vsel %vm699_vm2, %v2192_v1, %v2164_v15  ;;  %v2410_v44 = vpop.permute.xlu0 %2409 }
 0x21e   : > { %v3850_v3 = vadd.f32 %v2836_v17, %v2194_v22  ;;  %v3852_v25 = vadd.f32 %v2841_v50, %v2208_v62  ;;  %v2449_v21 = vsel %vm944_vm3, %v3842_v24, %v2410_v44 }
 0x21f   : > { %v2453_v13 = vadd.f32 %v2449_v21, %v2209_v26 }
 0x220   : > { %v3857_v45 = vpop.permute.xlu1 %2407 }
 0x221   : > { %v2414_v18 = vpop.permute.xlu0 %2413  ;;  %2951 = vtanh.f32 %v2453_v13 }
 0x222   : > { %v2447_v54 = vsel %vm944_vm3, %v2410_v44, %v2414_v18 }
 0x223   : > { %v2454_v30 = vadd.f32 %v2447_v54, %v2210_v19 }
 0x224   : > { %v2412_v51 = vpop.permute.xlu1 %2411 }
 0x225   : > { %2953 = vtanh.f32 %v2454_v30  ;;  %v2450_v16 = vsel %vm944_vm3, %v3857_v45, %v2412_v51  ;;  %v2418_v4 = vpop.permute.xlu0 %2417 }
 0x226   : > { %v2461_v14 = vadd.f32 %v2450_v16, %v2217_v27  ;;  %v2445_v38 = vsel %vm944_vm3, %v2414_v18, %v2418_v4 }
 0x227   : > { %v2455_v31 = vadd.f32 %v2445_v38, %v2211_v46 }
 0x228   : > { %v2416_v26 = vpop.permute.xlu1 %2415  ;;  %2955 = vtanh.f32 %v2461_v14 }
 0x229   : > { %v2448_v15 = vsel %vm944_vm3, %v2412_v51, %v2416_v26  ;;  %v2422_v53 = vpop.permute.xlu0 %2421  ;;  %2957 = vtanh.f32 %v2455_v31 }
 0x22a   : > { %v2462_v17 = vadd.f32 %v2448_v15, %v2218_v6  ;;  %v2443_v41 = vsel %vm944_vm3, %v2418_v4, %v2422_v53 }
 0x22b   : > { %v2456_v50 = vadd.f32 %v2443_v41, %v2212_v39  ;;  %v2952_v5 = vpop.eup %2951 }
 0x22c   : > { %2959 = vtanh.f32 %v2462_v17  ;;  %v2420_v60 = vpop.permute.xlu1 %2419 }
 0x22d   : > { %2961 = vtanh.f32 %v2456_v50  ;;  %v2446_v48 = vsel %vm944_vm3, %v2416_v26, %v2420_v60  ;;  %v2426_v19 = vpop.permute.xlu0 %2425 }
 0x22e   : > { %v2463_v2 = vadd.f32 %v2446_v48, %v2219_v32  ;;  %v2441_v49 = vsel %vm944_vm3, %v2422_v53, %v2426_v19 }
 0x22f   : > { %v2954_v27 = vpop.eup %2953  ;;  %v2457_v63 = vadd.f32 %v2441_v49, %v2213_v23 }
 0x230   : > { %v2754_v46 = vpack.c.bf16 %v2954_v27, %v2952_v5  ;;  %v2424_v33 = vpop.permute.xlu1 %2423  ;;  %2963 = vtanh.f32 %v2463_v2 }
 0x231   : > { %v2444_v52 = vsel %vm944_vm3, %v2420_v60, %v2424_v33  ;;  %v2430_v0 = vpop.permute.xlu0 %2429  ;;  %2965 = vtanh.f32 %v2457_v63 }
 0x232   : > { %2533 = vst [vmem:[%s3877_s12] sm:$0xff] %v2754_v46  ;;  %v2464_v6 = vadd.f32 %v2444_v52, %v2220_v55  ;;  %v2439_v57 = vsel %vm944_vm3, %v2426_v19, %v2430_v0  ;;  %v2956_v20 = vpop.eup %2955 }
 0x233   : > { %v2458_v39 = vadd.f32 %v2439_v57, %v3826_v7  ;;  %v2958_v35 = vpop.eup %2957 }
 0x234   : > { %2967 = vtanh.f32 %v2464_v6  ;;  %v2428_v59 = vpop.permute.xlu1 %2427 }
 0x235   : > { %2969 = vtanh.f32 %v2458_v39  ;;  %v2442_v32 = vsel %vm944_vm3, %v2424_v33, %v2428_v59  ;;  %v2434_v34 = vpop.permute.xlu0 %2433 }
 0x236   : > { %v2960_v23 = vpop.eup %2959  ;;  %v2465_v8 = vadd.f32 %v2442_v32, %v3830_v10  ;;  %v2437_v42 = vsel %vm944_vm3, %v2430_v0, %v2434_v34  ;;  %v2451_v43 = vsel %vm944_vm3, %v2434_v34, %v3842_v24 }
 0x237   : > { %v2962_v55 = vpop.eup %2961  ;;  %v2758_v58 = vpack.c.bf16 %v2960_v23, %v2956_v20  ;;  %v2459_v7 = vadd.f32 %v2437_v42, %v3836_v47  ;;  %v2460_v28 = vadd.f32 %v2451_v43, %v3838_v56 }
 0x238   : > { %v2755_v36 = vpack.c.bf16 %v2962_v55, %v2958_v35  ;;  %v2432_v40 = vpop.permute.xlu1 %2431 }
 0x239   : > { %2537 = vst [vmem:[%s3877_s12 + $0x20] sm:$0x33] %v2758_v58  ;;  %2971 = vtanh.f32 %v2459_v7  ;;  %v2440_v10 = vsel %vm944_vm3, %v2428_v59, %v2432_v40 }
 0x23a   : > { %2534 = vst [vmem:[%s3877_s12 + $0x8] sm:$0xff] %v2755_v36  ;;  %2973 = vtanh.f32 %v2460_v28  ;;  %v2466_v9 = vadd.f32 %v2440_v10, %v3844_v12  ;;  %v2964_v61 = vpop.eup %2963 }
 0x23b   : > { %2975 = vtanh.f32 %v2465_v8  ;;  %v2966_v47 = vpop.eup %2965 }
 0x23c   : > { %2977 = vtanh.f32 %v2466_v9  ;;  %v2436_v29 = vpop.permute.xlu1 %2435 }
 0x23d   : > { %v2438_v56 = vsel %vm944_vm3, %v2432_v40, %v2436_v29  ;;  %v2452_v11 = vsel %vm944_vm3, %v2436_v29, %v3857_v45 }
 0x23e   : > { %v2968_v24 = vpop.eup %2967  ;;  %v2467_v1 = vadd.f32 %v2438_v56, %v3850_v3  ;;  %v2468_v12 = vadd.f32 %v2452_v11, %v3852_v25  ;;  %v2565_v25 = vld [vmem:[%s3877_s12] sm:$0xff] (%p3109_p5) }
 0x23f   : > { %v2970_v22 = vpop.eup %2969  ;;  %v2759_v62 = vpack.c.bf16 %v2968_v24, %v2964_v61  ;;  %2566 = vst [vmem:[%s2552_s6] sm:$0xff] (%p3109_p5), %v2565_v25 }
 0x240   : > { %v2756_v44 = vpack.c.bf16 %v2970_v22, %v2966_v47  ;;  %2979 = vtanh.f32 %v2467_v1  ;;  %v2573_v38 = vld [vmem:[%s3877_s12 + $0x20] sm:$0xff] (%p3109_p5) }
 0x241   : > { %2538 = vst [vmem:[%s3877_s12 + $0x28] sm:$0x33] %v2759_v62  ;;  %2981 = vtanh.f32 %v2468_v12  ;;  %v2567_v16 = vld [vmem:[%s3877_s12 + $0x8] sm:$0xff] (%p3109_p5)  ;;  %2574 = vst [vmem:[%s2552_s6 + $0x40] sm:$0xff] (%p3109_p5), %v2573_v38 }
 0x242   : > { %2535 = vst [vmem:[%s3877_s12 + $0x10] sm:$0xff] %v2756_v44  ;;  %2568 = vst [vmem:[%s2552_s6 + $0x8] sm:$0xff] (%p3109_p5), %v2567_v16 }
 0x243   : > { %v2972_v21 = vpop.eup %2971 }
 0x244   : > { %v2974_v13 = vpop.eup %2973 }
 0x245   : > { %v2976_v18 = vpop.eup %2975  ;;  %v2757_v37 = vpack.c.bf16 %v2974_v13, %v2972_v21 }
 0x246   : > { %v2978_v45 = vpop.eup %2977 }
 0x247   : > { %2536 = vst [vmem:[%s3877_s12 + $0x18] sm:$0xff] %v2757_v37  ;;  %v2760_v54 = vpack.c.bf16 %v2978_v45, %v2976_v18 }
 0x248   : > { %2547 = sbr.rel (!%p3109_p5) target bundleno = 599 (0x257), region = 36  ;;  %v2575_v31 = vld [vmem:[%s3877_s12 + $0x28] sm:$0xff] (%p3109_p5) }
 0x249   : > { %2539 = vst [vmem:[%s3877_s12 + $0x30] sm:$0x33] %v2760_v54  ;;  %v2569_v4 = vld [vmem:[%s3877_s12 + $0x10] sm:$0xff] (%p3109_p5)  ;;  %2576 = vst [vmem:[%s2552_s6 + $0x48] sm:$0xff] (%p3109_p5), %v2575_v31 }
 0x24a   : > { %v2980_v3 = vpop.eup %2979  ;;  %2570 = vst [vmem:[%s2552_s6 + $0x10] sm:$0xff] (%p3109_p5), %v2569_v4 }
 0x24b   : > { %v2982_v30 = vpop.eup %2981 }
 0x24c   : > { %v2761_v51 = vpack.c.bf16 %v2982_v30, %v2980_v3 }
 0x24e   : > { %2540 = vst [vmem:[%s3877_s12 + $0x38] sm:$0x33] %v2761_v51  ;;  %v2571_v14 = vld [vmem:[%s3877_s12 + $0x18] sm:$0xff] (%p3109_p5) }
 0x24f   : > { %2572 = vst [vmem:[%s2552_s6 + $0x18] sm:$0xff] %v2571_v14 }
 0x250   : > { %v2577_v26 = vld [vmem:[%s3877_s12 + $0x30] sm:$0xff] }
 0x251   : > { %2578 = vst [vmem:[%s2552_s6 + $0x50] sm:$0xff] %v2577_v26 }
 0x255   : > { %v2579_v15 = vld [vmem:[%s3877_s12 + $0x38] sm:$0xff] }
 0x256   : > { %2580 = vst [vmem:[%s2552_s6 + $0x58] sm:$0xff] %v2579_v15 }
 0x257 PF: > { %s13_s18 = sadd.s32 1, %s3037_s18   ;;  %s3957_s12 = smov %s3017_s13 }
 0x258   : > { %p10_p10 = scmp.ge.s32.totalorder %s13_s18, 6   ;;  %s3958_s13 = smov %s3120_s27 }
 0x259   : > { %s3959_s14 = smov %s3029_s16  ;;  %s3960_s15 = smov %s3033_s17 }
 0x25a   : > { %s3961_s16 = smov %s3964_s19  ;;  %s3962_s17 = smov %s3968_s20 }
 0x25b   :  { %12 = sbr.rel (!%p10_p10) target bundleno = 4 (0x4), region = 85 }

</bundles_post_ra>
